<compile_context>
chip_gen: v7x
topology: tpu7x:2x2x1
jax: 0.10.0
libtpu: 0.0.40
codegen_flags: <defaults>
</compile_context>

<pallas_src>
import jax
import jax.numpy as jnp
from jax.experimental import pallas as pl
from jax.experimental.pallas import tpu as pltpu

HIDDEN = 300
H_PAD = 384                    # 300 padded to a multiple of 128
DROP_P = 0.2
KEEP_P = 1.0 - DROP_P


def _mlp_kernel(x_ref, w1_ref, b1_ref, w2_ref, b2_ref, w3_ref, b3_ref,
                mask_ref, o_ref):
    # x_ref: (1, TB)            batch on the lane axis
    # w1_ref/b1_ref/b2_ref: (H_PAD, 1)   w2_ref: (H_PAD, H_PAD)
    # w3_ref: (1, H_PAD)        b3_ref: (1, 1)
    # mask_ref: (H_PAD, TB)     o_ref: (1, TB)
    x = x_ref[...]                                             # (1, TB)

    # ---- fc1 + ReLU: K=1 -> pure VPU broadcast, keep the MXU clear ---------
    h = w1_ref[...] * x + b1_ref[...]                          # (H_PAD, TB)
    h = jnp.maximum(h, 0.0)

    # ---- fc2 + ReLU on the MXU, f32 accumulation ---------------------------
    h = jnp.dot(w2_ref[...], h, preferred_element_type=jnp.float32)
    h = jnp.maximum(h + b2_ref[...], 0.0)                      # (H_PAD, TB)

    # ---- dropout: precomputed inverted mask (0 or 1/keep_p) ----------------
    h = h * mask_ref[...].astype(jnp.float32)

    # ---- fc3 ---------------------------------------------------------------
    out = jnp.dot(w3_ref[...], h, preferred_element_type=jnp.float32)
    o_ref[...] = (out + b3_ref[...]).astype(o_ref.dtype)       # (1, TB)


def network_forward(x, params, *, key=None, training=True, tb=256):
    """x: (N, 1) float32. params: padded, transposed-domain weights."""
    n = x.shape[0]
    n_pad = pl.cdiv(n, tb) * tb

    # lane-dense input: batch along the last (lane) axis, zero-padded
    x_row = jnp.zeros((1, n_pad), jnp.float32)
    x_row = x_row.at[0, :n].set(x[:, 0].astype(jnp.float32))

    if training:
        if key is None:
            key = jax.random.PRNGKey(0)
        keep = jax.random.bernoulli(key, KEEP_P, (H_PAD, n_pad))
        mask = jnp.where(keep, 1.0 / KEEP_P, 0.0).astype(jnp.bfloat16)
    else:
        mask = jnp.ones((H_PAD, n_pad), jnp.bfloat16)

    w1, b1 = params["w1"], params["b1"]
    w2, b2 = params["w2"], params["b2"]
    w3, b3 = params["w3"], params["b3"]

    const = lambda shape: pl.BlockSpec(shape, lambda i: (0, 0))  # resident weights

    out_row = pl.pallas_call(
        _mlp_kernel,
        out_shape=jax.ShapeDtypeStruct((1, n_pad), jnp.float32),
        grid_spec=pltpu.PrefetchScalarGridSpec(
            num_scalar_prefetch=0,
            grid=(n_pad // tb,),
            in_specs=[
                pl.BlockSpec((1, tb), lambda i: (0, i)),       # x (lane-dense)
                const(w1.shape),                               # (H_PAD, 1)
                const(b1.shape),                               # (H_PAD, 1)
                const(w2.shape),                               # (H_PAD, H_PAD)
                const(b2.shape),                               # (H_PAD, 1)
                const(w3.shape),                               # (1, H_PAD)
                const(b3.shape),                               # (1, 1)
                pl.BlockSpec((H_PAD, tb), lambda i: (0, i)),   # dropout mask
            ],
            out_specs=pl.BlockSpec((1, tb), lambda i: (0, i)),  # lane-dense out
        ),
        compiler_params=pltpu.CompilerParams(
            dimension_semantics=("parallel",)),                 # batch axis independent
    )(x_row, w1, b1, w2, b2, w3, b3, mask)

    return out_row[0, :n].reshape(n, 1)


def init_params(key):
    """PyTorch nn.Linear default init (U[-1/sqrt(fan_in), 1/sqrt(fan_in)]),
    then zero-padded to the lane-aligned hidden width and laid out for the
    transposed-domain kernel."""
    ks = jax.random.split(key, 6)

    def lin(kw, kb, fan_in, fan_out):
        bound = 1.0 / (fan_in ** 0.5)
        w = jax.random.uniform(kw, (fan_out, fan_in), jnp.float32, -bound, bound)
        b = jax.random.uniform(kb, (fan_out,), jnp.float32, -bound, bound)
        return w, b

    w1, b1 = lin(ks[0], ks[1], 1, HIDDEN)        # (300, 1), (300,)
    w2, b2 = lin(ks[2], ks[3], HIDDEN, HIDDEN)   # (300, 300), (300,)
    w3, b3 = lin(ks[4], ks[5], HIDDEN, 1)        # (1, 300), (1,)

    hp = H_PAD - HIDDEN
    return dict(
        w1=jnp.pad(w1, ((0, hp), (0, 0))),                 # (384, 1)
        b1=jnp.pad(b1, (0, hp)).reshape(H_PAD, 1),         # (384, 1)
        w2=jnp.pad(w2, ((0, hp), (0, hp))),                # (384, 384)
        b2=jnp.pad(b2, (0, hp)).reshape(H_PAD, 1),         # (384, 1)
        w3=jnp.pad(w3, ((0, 0), (0, hp))),                 # (1, 384)
        b3=b3.reshape(1, 1),                               # (1, 1)
    )


def reference_eval(x, p):
    """Pure-JAX reference (dropout = identity), same transposed-domain math."""
    xr = x[:, 0].astype(jnp.float32)[None, :]              # (1, N)
    h = jnp.maximum(p["w1"] @ xr + p["b1"], 0.0)
    h = jnp.maximum(p["w2"] @ h + p["b2"], 0.0)
    out = p["w3"] @ h + p["b3"]
    return out[0].reshape(-1, 1)


if __name__ == "__main__":
    key = jax.random.PRNGKey(0)
    pkey, xkey, dkey = jax.random.split(key, 3)

    params = init_params(pkey)
    x = jax.random.normal(xkey, (8, 1), dtype=jnp.float32)   # batch=8, in_features=1

    # eval mode (dropout = identity): check against a pure-JAX reference
    out_eval = jax.block_until_ready(network_forward(x, params, training=False))
    ref = reference_eval(x, params)
    assert out_eval.shape == (8, 1) and out_eval.dtype == jnp.float32
    assert jnp.allclose(out_eval, ref, rtol=1e-3, atol=1e-3)

    # training mode (matches the PyTorch module's default self.training == True)
    out_train = jax.block_until_ready(
        network_forward(x, params, key=dkey, training=True))
    assert out_train.shape == (8, 1) and out_train.dtype == jnp.float32

    print("KERNEL_OK")
</pallas_src>

<mosaic_0001>
module attributes {stable_mosaic.version = 11 : i64} {
  func.func @_mlp_kernel(%arg0: i32, %arg1: memref<1x256xf32, #tpu.memory_space<vmem>>, %arg2: memref<384x1xf32, #tpu.memory_space<vmem>>, %arg3: memref<384x1xf32, #tpu.memory_space<vmem>>, %arg4: memref<384x384xf32, #tpu.memory_space<vmem>>, %arg5: memref<384x1xf32, #tpu.memory_space<vmem>>, %arg6: memref<1x384xf32, #tpu.memory_space<vmem>>, %arg7: memref<1x1xf32, #tpu.memory_space<vmem>>, %arg8: memref<384x256xbf16, #tpu.memory_space<vmem>>, %arg9: memref<1x256xf32, #tpu.memory_space<vmem>>) attributes {dimension_semantics = [#tpu.dimension_semantics<parallel>], iteration_bounds = array<i64: 1>, scalar_prefetch = 0 : i64, scratch_operands = 0 : i64, tpu.core_type = #tpu.core_type<tc>, window_params = [{transform_indices = @transform_0, window_bounds = array<i64: 1, 256>}, {pipeline_mode = #tpu.pipeline_mode<synchronous>, transform_indices = @transform_1, window_bounds = array<i64: 384, 1>}, {pipeline_mode = #tpu.pipeline_mode<synchronous>, transform_indices = @transform_2, window_bounds = array<i64: 384, 1>}, {pipeline_mode = #tpu.pipeline_mode<synchronous>, transform_indices = @transform_3, window_bounds = array<i64: 384, 384>}, {pipeline_mode = #tpu.pipeline_mode<synchronous>, transform_indices = @transform_4, window_bounds = array<i64: 384, 1>}, {pipeline_mode = #tpu.pipeline_mode<synchronous>, transform_indices = @transform_5, window_bounds = array<i64: 1, 384>}, {pipeline_mode = #tpu.pipeline_mode<synchronous>, transform_indices = @transform_6, window_bounds = array<i64: 1, 1>}, {transform_indices = @transform_7, window_bounds = array<i64: 384, 256>}, {transform_indices = @transform_8, window_bounds = array<i64: 1, 256>}]} {
    %c0 = arith.constant 0 : index
    %c0_0 = arith.constant 0 : index
    %0 = vector.load %arg1[%c0, %c0_0] : memref<1x256xf32, #tpu.memory_space<vmem>>, vector<1x256xf32>
    %c0_1 = arith.constant 0 : index
    %c0_2 = arith.constant 0 : index
    %1 = vector.load %arg2[%c0_1, %c0_2] : memref<384x1xf32, #tpu.memory_space<vmem>>, vector<384x1xf32>
    %2 = vector.broadcast %1 : vector<384x1xf32> to vector<384x256xf32>
    %3 = vector.broadcast %0 : vector<1x256xf32> to vector<384x256xf32>
    %4 = arith.mulf %2, %3 : vector<384x256xf32>
    %c0_3 = arith.constant 0 : index
    %c0_4 = arith.constant 0 : index
    %5 = vector.load %arg3[%c0_3, %c0_4] : memref<384x1xf32, #tpu.memory_space<vmem>>, vector<384x1xf32>
    %6 = vector.broadcast %5 : vector<384x1xf32> to vector<384x256xf32>
    %7 = arith.addf %4, %6 : vector<384x256xf32>
    %cst = arith.constant 0.000000e+00 : f32
    %8 = vector.broadcast %cst : f32 to vector<384x256xf32>
    %9 = arith.maximumf %7, %8 : vector<384x256xf32>
    %c0_5 = arith.constant 0 : index
    %c0_6 = arith.constant 0 : index
    %10 = vector.load %arg4[%c0_5, %c0_6] : memref<384x384xf32, #tpu.memory_space<vmem>>, vector<384x384xf32>
    %cst_7 = arith.constant dense<0.000000e+00> : vector<384x256xf32>
    %11 = tpu.matmul %10, %9, %cst_7 {dimension_numbers = #tpu.dot_dimension_numbers<[1], [0], [0], [1], [0, 0, 1, 1], [], []>} : vector<384x384xf32>, vector<384x256xf32>, vector<384x256xf32> -> vector<384x256xf32>
    %c0_8 = arith.constant 0 : index
    %c0_9 = arith.constant 0 : index
    %12 = vector.load %arg5[%c0_8, %c0_9] : memref<384x1xf32, #tpu.memory_space<vmem>>, vector<384x1xf32>
    %13 = vector.broadcast %12 : vector<384x1xf32> to vector<384x256xf32>
    %14 = arith.addf %11, %13 : vector<384x256xf32>
    %cst_10 = arith.constant 0.000000e+00 : f32
    %15 = vector.broadcast %cst_10 : f32 to vector<384x256xf32>
    %16 = arith.maximumf %14, %15 : vector<384x256xf32>
    %c0_11 = arith.constant 0 : index
    %c0_12 = arith.constant 0 : index
    %17 = vector.load %arg8[%c0_11, %c0_12] : memref<384x256xbf16, #tpu.memory_space<vmem>>, vector<384x256xbf16>
    %18 = arith.extf %17 : vector<384x256xbf16> to vector<384x256xf32>
    %19 = arith.mulf %16, %18 : vector<384x256xf32>
    %c0_13 = arith.constant 0 : index
    %c0_14 = arith.constant 0 : index
    %20 = vector.load %arg6[%c0_13, %c0_14] : memref<1x384xf32, #tpu.memory_space<vmem>>, vector<1x384xf32>
    %cst_15 = arith.constant dense<0.000000e+00> : vector<1x256xf32>
    %21 = tpu.matmul %20, %19, %cst_15 {dimension_numbers = #tpu.dot_dimension_numbers<[1], [0], [0], [1], [0, 0, 1, 1], [], []>} : vector<1x384xf32>, vector<384x256xf32>, vector<1x256xf32> -> vector<1x256xf32>
    %c0_16 = arith.constant 0 : index
    %c0_17 = arith.constant 0 : index
    %22 = vector.load %arg7[%c0_16, %c0_17] : memref<1x1xf32, #tpu.memory_space<vmem>>, vector<1x1xf32>
    %23 = vector.broadcast %22 : vector<1x1xf32> to vector<1x256xf32>
    %24 = arith.addf %21, %23 : vector<1x256xf32>
    %c0_18 = arith.constant 0 : index
    %c0_19 = arith.constant 0 : index
    %25 = vector.load %arg9[%c0_18, %c0_19] : memref<1x256xf32, #tpu.memory_space<vmem>>, vector<1x256xf32>
    tpu.vector_store %arg9[%c0_18, %c0_19], %24 {strides = array<i32>} : memref<1x256xf32, #tpu.memory_space<vmem>>, vector<1x256xf32>,
    return
  }
  func.func @transform_0(%arg0: i32) -> (i32, i32) {
    %c0_i32 = arith.constant 0 : i32
    %c0_i32_0 = arith.constant 0 : i32
    return %c0_i32, %arg0 : i32, i32
  }
  func.func @transform_1(%arg0: i32) -> (i32, i32) {
    %c0_i32 = arith.constant 0 : i32
    %c0_i32_0 = arith.constant 0 : i32
    %c0_i32_1 = arith.constant 0 : i32
    return %c0_i32, %c0_i32_0 : i32, i32
  }
  func.func @transform_2(%arg0: i32) -> (i32, i32) {
    %c0_i32 = arith.constant 0 : i32
    %c0_i32_0 = arith.constant 0 : i32
    %c0_i32_1 = arith.constant 0 : i32
    return %c0_i32, %c0_i32_0 : i32, i32
  }
  func.func @transform_3(%arg0: i32) -> (i32, i32) {
    %c0_i32 = arith.constant 0 : i32
    %c0_i32_0 = arith.constant 0 : i32
    %c0_i32_1 = arith.constant 0 : i32
    return %c0_i32, %c0_i32_0 : i32, i32
  }
  func.func @transform_4(%arg0: i32) -> (i32, i32) {
    %c0_i32 = arith.constant 0 : i32
    %c0_i32_0 = arith.constant 0 : i32
    %c0_i32_1 = arith.constant 0 : i32
    return %c0_i32, %c0_i32_0 : i32, i32
  }
  func.func @transform_5(%arg0: i32) -> (i32, i32) {
    %c0_i32 = arith.constant 0 : i32
    %c0_i32_0 = arith.constant 0 : i32
    %c0_i32_1 = arith.constant 0 : i32
    return %c0_i32, %c0_i32_0 : i32, i32
  }
  func.func @transform_6(%arg0: i32) -> (i32, i32) {
    %c0_i32 = arith.constant 0 : i32
    %c0_i32_0 = arith.constant 0 : i32
    %c0_i32_1 = arith.constant 0 : i32
    return %c0_i32, %c0_i32_0 : i32, i32
  }
  func.func @transform_7(%arg0: i32) -> (i32, i32) {
    %c0_i32 = arith.constant 0 : i32
    %c0_i32_0 = arith.constant 0 : i32
    return %c0_i32, %arg0 : i32, i32
  }
  func.func @transform_8(%arg0: i32) -> (i32, i32) {
    %c0_i32 = arith.constant 0 : i32
    %c0_i32_0 = arith.constant 0 : i32
    return %c0_i32, %arg0 : i32, i32
  }
}

</mosaic_0001>

<bundles_post_ra>
// kernel: tpu_custom_call.1
= control target key start
LH: loop header
LB: loop body
LE: loop exit
PB: predicated region body
PF: predicated region fallthrough
CT: control target
= control target key end

     0   :  { %s4171_s0 = inlined_call_operand.vmem [shape: f32[1,256], index: 0, kind: input, shape index: {}]   ;;  %s4172_s1 = inlined_call_operand.vmem [shape: f32[384,1], index: 1, kind: input, shape index: {}]   ;;  %s4173_s2 = inlined_call_operand.vmem [shape: f32[384,1], index: 2, kind: input, shape index: {}]   ;;  %s4174_s3 = inlined_call_operand.vmem [shape: f32[384,384], index: 3, kind: input, shape index: {}]   ;;  %s4175_s4 = inlined_call_operand.vmem [shape: f32[384,1], index: 4, kind: input, shape index: {}]   ;;  %s4176_s5 = inlined_call_operand.vmem [shape: f32[1,384], index: 5, kind: input, shape index: {}]   ;;  %s4177_s6 = inlined_call_operand.<no memory space> [shape: f32[1,1], index: 6, kind: input, shape index: {}]   ;;  %s4178_s7 = inlined_call_operand.hbm [shape: bf16[384,256], index: 7, kind: input, shape index: {}]   ;;  %s4179_s8 = inlined_call_operand.hbm [shape: f32[1,256], index: 8, kind: output, shape index: {}]  }
   0x1   :  { %v13_v0 = vstv %s4177_s6 }
   0x2   :  { %14 = vst [vmem:[#allocation2] sm:$0x1] %v13_v0 }
   0x3   :  { %15 = vsyncpa [#allocation4], 0 }
   0x4   :  { %16 = vsyncpa [#allocation5], 0  ;;  %s3049_s29 = smov [#allocation3]   ;;  %s3001_s11 = scalar_lea.hbm %s4178_s7, 6144 }
   0x5   :  { %s36_s30 = sshll.u32 %s3049_s29, 4  ;;  %p3002_p0 = scmp.ne.s32.totalorder %s4178_s7, %s3001_s11  ;;  %s37_s30 = int_to_ptr.vmem [resolvable:$true] %s36_s30 }
   0x6   :  { %p3005_p1 = scmp.lt.u32.totalorder %s3001_s11, %s4178_s7 }
   0x8   :  { %p3007_p2 = pnand %p3005_p1, %p3002_p0 }
   0xa   :  { %3010 = shalt.err (!%p3007_p2)
}
   0xb   :  { %s3011_s6 = scalar_lea.vmem %s37_s30, 6144  ;;  %p3016_p4 = scmp.lt.s32.totalorder %s37_s30, %s37_s30 }
   0xc   :  { %p3012_p3 = scmp.ne.s32.totalorder %s37_s30, %s3011_s6  ;;  %p3017_p5 = scmp.lt.s32.totalorder %s3011_s6, %s3011_s6 }
   0xe   :  { %p3018_p6 = por %p3017_p5, %p3016_p4 }
  0x10   :  { %p3019_p7 = pnand %p3018_p6, %p3012_p3 }
  0x12   :  { %3022 = shalt.err (!%p3019_p7)
}
  0x13   :  { %s3050_s16 = smov 128   ;;  %s3051_s17 = smov 8  }
  0x14   :  { %42 = dma.hbm_to_vmem [thread:$0]  %s4178_s7, 6144, %s37_s30, [#allocation4], %s3050_s16, %s3050_s16, %s3051_s17  }
  0x15   :  { %3045 = dma.done.wait [#allocation4], 6144  }
  0x16   :  { %3046 = vsyncadd [#allocation4], 4294961152  ;;  %v3052_v1 = vmov 0   ;;  %v442_v2 = vld [vmem:[%s4173_s2] sm:$0xff]  ;;  %v443_v4 = vld [vmem:[%s4173_s2 + $0x8] sm:$0xff]  ;;  %v336_v62 = vlaneseq }
  0x17   :  { %2999 = vset.pattern.permute.xlu1 %v3052_v1  ;;  %2998 = vset.pattern.permute.xlu0 %v3052_v1  ;;  %v47_v3 = vld [vmem:[%s4172_s1] sm:$0xff]  ;;  %v48_v5 = vld [vmem:[%s4172_s1 + $0x8] sm:$0xff]  ;;  %v50_v6 = vld [vmem:[%s4172_s1 + $0x18] sm:$0xff] }
  0x18   :  { %492 = vperm.xlu1 %2999, %v442_v2   ;;  %97 = vperm.xlu0 %2998, %v47_v3   ;;  %v49_v7 = vld [vmem:[%s4172_s1 + $0x10] sm:$0xff]  ;;  %v445_v8 = vld [vmem:[%s4173_s2 + $0x18] sm:$0xff]  ;;  %v52_v10 = vld [vmem:[%s4172_s1 + $0x28] sm:$0xff]  ;;  %v3303_v1 = vshrl.u32 %v336_v62, 7  ;;  %vm2585_vm0 = vcmp.lt.s32.totalorder %v336_v62, 256 }
  0x19   :  { %v444_v9 = vld [vmem:[%s4173_s2 + $0x10] sm:$0xff]  ;;  %v51_v11 = vld [vmem:[%s4172_s1 + $0x20] sm:$0xff]  ;;  %v447_v12 = vld [vmem:[%s4173_s2 + $0x28] sm:$0xff] }
  0x1a   :  { %v446_v13 = vld [vmem:[%s4173_s2 + $0x20] sm:$0xff]  ;;  %v54_v14 = vld [vmem:[%s4172_s1 + $0x38] sm:$0xff]  ;;  %v53_v15 = vld [vmem:[%s4172_s1 + $0x30] sm:$0xff] }
  0x1b   :  { %v449_v16 = vld [vmem:[%s4173_s2 + $0x38] sm:$0xff]  ;;  %v448_v17 = vld [vmem:[%s4173_s2 + $0x30] sm:$0xff]  ;;  %v56_v18 = vld [vmem:[%s4172_s1 + $0x48] sm:$0xff] }
  0x1c   :  { %497 = vperm.xlu1 %2999, %v443_v4   ;;  %102 = vperm.xlu0 %2998, %v48_v5   ;;  %v55_v19 = vld [vmem:[%s4172_s1 + $0x40] sm:$0xff]  ;;  %v451_v20 = vld [vmem:[%s4173_s2 + $0x48] sm:$0xff]  ;;  %v58_v22 = vld [vmem:[%s4172_s1 + $0x58] sm:$0xff]  ;;  %v3312_v4 = vsub.s32 0, %v3303_v1  ;;  %v342_v5 = vsub.s32 1, %v3303_v1 }
  0x1d   :  { %v450_v21 = vld [vmem:[%s4173_s2 + $0x40] sm:$0xff]  ;;  %v57_v23 = vld [vmem:[%s4172_s1 + $0x50] sm:$0xff]  ;;  %v453_v24 = vld [vmem:[%s4173_s2 + $0x58] sm:$0xff] }
  0x1e   :  { %v452_v25 = vld [vmem:[%s4173_s2 + $0x50] sm:$0xff]  ;;  %v60_v26 = vld [vmem:[%s4172_s1 + $0x68] sm:$0xff]  ;;  %v59_v27 = vld [vmem:[%s4172_s1 + $0x60] sm:$0xff] }
  0x1f   :  { %v455_v28 = vld [vmem:[%s4173_s2 + $0x68] sm:$0xff]  ;;  %v454_v29 = vld [vmem:[%s4173_s2 + $0x60] sm:$0xff]  ;;  %v62_v30 = vld [vmem:[%s4172_s1 + $0x78] sm:$0xff] }
  0x20   :  { %112 = vperm.xlu1 %2999, %v50_v6   ;;  %107 = vperm.xlu0 %2998, %v49_v7   ;;  %v61_v31 = vld [vmem:[%s4172_s1 + $0x70] sm:$0xff]  ;;  %v457_v32 = vld [vmem:[%s4173_s2 + $0x78] sm:$0xff]  ;;  %v64_v34 = vld [vmem:[%s4172_s1 + $0x88] sm:$0xff] }
  0x21   :  { %v456_v33 = vld [vmem:[%s4173_s2 + $0x70] sm:$0xff]  ;;  %v63_v35 = vld [vmem:[%s4172_s1 + $0x80] sm:$0xff]  ;;  %v80_v36 = vld [vmem:[%s4172_s1 + $0x108] sm:$0xff] }
  0x22   :  { %v79_v37 = vld [vmem:[%s4172_s1 + $0x100] sm:$0xff]  ;;  %v459_v38 = vld [vmem:[%s4173_s2 + $0x88] sm:$0xff]  ;;  %v66_v40 = vld [vmem:[%s4172_s1 + $0x98] sm:$0xff] }
  0x23   :  { %v458_v39 = vld [vmem:[%s4173_s2 + $0x80] sm:$0xff]  ;;  %v65_v41 = vld [vmem:[%s4172_s1 + $0x90] sm:$0xff]  ;;  %v475_v42 = vld [vmem:[%s4173_s2 + $0x108] sm:$0xff] }
  0x24   :  { %507 = vperm.xlu1 %2999, %v445_v8   ;;  %502 = vperm.xlu0 %2998, %v444_v9   ;;  %v474_v43 = vld [vmem:[%s4173_s2 + $0x100] sm:$0xff]  ;;  %v82_v44 = vld [vmem:[%s4172_s1 + $0x118] sm:$0xff]  ;;  %v81_v45 = vld [vmem:[%s4172_s1 + $0x110] sm:$0xff] }
  0x25   :  { %v461_v46 = vld [vmem:[%s4173_s2 + $0x98] sm:$0xff]  ;;  %v460_v47 = vld [vmem:[%s4173_s2 + $0x90] sm:$0xff]  ;;  %v68_v48 = vld [vmem:[%s4172_s1 + $0xa8] sm:$0xff] }
  0x26   :  { %v67_v49 = vld [vmem:[%s4172_s1 + $0xa0] sm:$0xff]  ;;  %v477_v50 = vld [vmem:[%s4173_s2 + $0x118] sm:$0xff]  ;;  %v476_v51 = vld [vmem:[%s4173_s2 + $0x110] sm:$0xff] }
  0x27   :  { %v84_v52 = vld [vmem:[%s4172_s1 + $0x128] sm:$0xff]  ;;  %v83_v53 = vld [vmem:[%s4172_s1 + $0x120] sm:$0xff]  ;;  %v70_v56 = vld [vmem:[%s4172_s1 + $0xb8] sm:$0xff] }
  0x28   :  { %122 = vperm.xlu1 %2999, %v52_v10   ;;  %117 = vperm.xlu0 %2998, %v51_v11   ;;  %v463_v54 = vld [vmem:[%s4173_s2 + $0xa8] sm:$0xff]  ;;  %v462_v55 = vld [vmem:[%s4173_s2 + $0xa0] sm:$0xff]  ;;  %v69_v57 = vld [vmem:[%s4172_s1 + $0xb0] sm:$0xff] }
  0x29   :  { %v479_v58 = vld [vmem:[%s4173_s2 + $0x128] sm:$0xff]  ;;  %v478_v59 = vld [vmem:[%s4173_s2 + $0x120] sm:$0xff]  ;;  %v86_v60 = vld [vmem:[%s4172_s1 + $0x138] sm:$0xff] }
  0x2a   :  { %v85_v61 = vld [vmem:[%s4172_s1 + $0x130] sm:$0xff]  ;;  %v465_v63 = vld [vmem:[%s4173_s2 + $0xb8] sm:$0xff]  ;;  %v72_v2 = vld [vmem:[%s4172_s1 + $0xc8] sm:$0xff] }
  0x2b   :  { %v464_v0 = vld [vmem:[%s4173_s2 + $0xb0] sm:$0xff]  ;;  %v71_v3 = vld [vmem:[%s4172_s1 + $0xc0] sm:$0xff]  ;;  %v481_v9 = vld [vmem:[%s4173_s2 + $0x138] sm:$0xff] }
  0x2c   :  { %517 = vperm.xlu1 %2999, %v447_v12   ;;  %512 = vperm.xlu0 %2998, %v446_v13   ;;  %v46_v6 = vld [vmem:[%s4171_s0] sm:$0x3]  ;;  %v480_v10 = vld [vmem:[%s4173_s2 + $0x130] sm:$0xff] }
  0x2d   :  { %v3319_v7 = vrot.slane %v46_v6, %v3312_v4  ;;  %v3323_v8 = vrot.slane %v46_v6, %v342_v5 }
  0x30   :  { %132 = vperm.xlu1 %2999, %v54_v14   ;;  %127 = vperm.xlu0 %2998, %v53_v15   ;;  %v88_v15 = vld [vmem:[%s4172_s1 + $0x148] sm:$0xff] }
  0x34   :  { %527 = vperm.xlu1 %2999, %v449_v16   ;;  %522 = vperm.xlu0 %2998, %v448_v17   ;;  %v87_v16 = vld [vmem:[%s4172_s1 + $0x140] sm:$0xff] }
  0x38   :  { %142 = vperm.xlu1 %2999, %v56_v18   ;;  %137 = vperm.xlu0 %2998, %v55_v19  }
  0x3c   :  { %537 = vperm.xlu1 %2999, %v451_v20   ;;  %532 = vperm.xlu0 %2998, %v450_v21   ;;  %v467_v21 = vld [vmem:[%s4173_s2 + $0xc8] sm:$0xff] }
  0x40   :  { %152 = vperm.xlu1 %2999, %v58_v22   ;;  %147 = vperm.xlu0 %2998, %v57_v23  }
  0x44   :  { %547 = vperm.xlu1 %2999, %v453_v24   ;;  %542 = vperm.xlu0 %2998, %v452_v25   ;;  %v466_v24 = vld [vmem:[%s4173_s2 + $0xc0] sm:$0xff] }
  0x48   :  { %162 = vperm.xlu1 %2999, %v60_v26   ;;  %157 = vperm.xlu0 %2998, %v59_v27  }
  0x4c   :  { %557 = vperm.xlu1 %2999, %v455_v28   ;;  %552 = vperm.xlu0 %2998, %v454_v29   ;;  %v74_v29 = vld [vmem:[%s4172_s1 + $0xd8] sm:$0xff] }
  0x50   :  { %172 = vperm.xlu1 %2999, %v62_v30   ;;  %167 = vperm.xlu0 %2998, %v61_v31  }
  0x54   :  { %567 = vperm.xlu1 %2999, %v457_v32   ;;  %562 = vperm.xlu0 %2998, %v456_v33  }
  0x58   :  { %182 = vperm.xlu1 %2999, %v64_v34   ;;  %177 = vperm.xlu0 %2998, %v63_v35  }
  0x5c   :  { %262 = vperm.xlu1 %2999, %v80_v36   ;;  %257 = vperm.xlu0 %2998, %v79_v37  }
  0x60   :  { %577 = vperm.xlu1 %2999, %v459_v38   ;;  %572 = vperm.xlu0 %2998, %v458_v39   ;;  %v73_v38 = vld [vmem:[%s4172_s1 + $0xd0] sm:$0xff] }
  0x64   :  { %192 = vperm.xlu1 %2999, %v66_v40   ;;  %187 = vperm.xlu0 %2998, %v65_v41  }
  0x68   :  { %657 = vperm.xlu1 %2999, %v475_v42   ;;  %652 = vperm.xlu0 %2998, %v474_v43  }
  0x6c   :  { %272 = vperm.xlu1 %2999, %v82_v44   ;;  %267 = vperm.xlu0 %2998, %v81_v45  }
  0x70   :  { %587 = vperm.xlu1 %2999, %v461_v46   ;;  %582 = vperm.xlu0 %2998, %v460_v47   ;;  %v483_v47 = vld [vmem:[%s4173_s2 + $0x148] sm:$0xff] }
  0x74   :  { %202 = vperm.xlu1 %2999, %v68_v48   ;;  %197 = vperm.xlu0 %2998, %v67_v49  }
  0x78   :  { %667 = vperm.xlu1 %2999, %v477_v50   ;;  %662 = vperm.xlu0 %2998, %v476_v51  }
  0x7c   :  { %282 = vperm.xlu1 %2999, %v84_v52   ;;  %277 = vperm.xlu0 %2998, %v83_v53   ;;  %v482_v52 = vld [vmem:[%s4173_s2 + $0x140] sm:$0xff] }
  0x80   :  { %597 = vperm.xlu1 %2999, %v463_v54   ;;  %592 = vperm.xlu0 %2998, %v462_v55  }
  0x84   :  { %212 = vperm.xlu1 %2999, %v70_v56   ;;  %207 = vperm.xlu0 %2998, %v69_v57  }
  0x88   :  { %677 = vperm.xlu1 %2999, %v479_v58   ;;  %672 = vperm.xlu0 %2998, %v478_v59  }
  0x8c   :  { %292 = vperm.xlu1 %2999, %v86_v60   ;;  %287 = vperm.xlu0 %2998, %v85_v61   ;;  %v90_v61 = vld [vmem:[%s4172_s1 + $0x158] sm:$0xff] }
  0x90   :  { %607 = vperm.xlu1 %2999, %v465_v63   ;;  %602 = vperm.xlu0 %2998, %v464_v0   ;;  %v89_v63 = vld [vmem:[%s4172_s1 + $0x150] sm:$0xff] }
  0x94   :  { %222 = vperm.xlu1 %2999, %v72_v2   ;;  %217 = vperm.xlu0 %2998, %v71_v3  }
  0x97   :  { %v493_v11 = vpop.permute.xlu1 %492  ;;  %v98_v12 = vpop.permute.xlu0 %97 }
  0x98   :  { %687 = vperm.xlu1 %2999, %v481_v9   ;;  %682 = vperm.xlu0 %2998, %v480_v10   ;;  %v346_v13 = vmul.f32 %v3319_v7, %v98_v12  ;;  %v347_v14 = vmul.f32 %v3323_v8, %v98_v12 }
  0x9a   :  { %v731_v22 = vadd.f32 %v493_v11, %v347_v14  ;;  %v730_v23 = vadd.f32 %v493_v11, %v346_v13 }
  0x9b   :  { %v498_v17 = vpop.permute.xlu1 %497  ;;  %v103_v18 = vpop.permute.xlu0 %102 }
  0x9c   :  { %v348_v19 = vmul.f32 %v3319_v7, %v103_v18  ;;  %v349_v20 = vmul.f32 %v3323_v8, %v103_v18  ;;  %302 = vperm.xlu1 %2999, %v88_v15   ;;  %297 = vperm.xlu0 %2998, %v87_v16   ;;  %v827_v30 = vmax.f32 %v731_v22, 0.0  ;;  %v826_v32 = vmax.f32 %v730_v23, 0.0  ;;  %v469_v15 = vld [vmem:[%s4173_s2 + $0xd8] sm:$0xff]  ;;  %v468_v16 = vld [vmem:[%s4173_s2 + $0xd0] sm:$0xff] }
  0x9e   :  { %v733_v25 = vadd.f32 %v498_v17, %v349_v20  ;;  %v732_v26 = vadd.f32 %v498_v17, %v348_v19 }
  0x9f   :  { %v113_v27 = vpop.permute.xlu1 %112  ;;  %v108_v28 = vpop.permute.xlu0 %107 }
  0xa0   :  { %617 = vperm.xlu1 %2999, %v467_v21   ;;  %612 = vperm.xlu0 %2998, %v466_v24   ;;  %v829_v31 = vmax.f32 %v733_v25, 0.0  ;;  %v828_v33 = vmax.f32 %v732_v26, 0.0  ;;  %v352_v34 = vmul.f32 %v3319_v7, %v113_v27  ;;  %v353_v35 = vmul.f32 %v3323_v8, %v113_v27  ;;  %v76_v25 = vld [vmem:[%s4172_s1 + $0xe8] sm:$0xff]  ;;  %v75_v26 = vld [vmem:[%s4172_s1 + $0xe0] sm:$0xff] }
  0xa1   :  { %v350_v36 = vmul.f32 %v3319_v7, %v108_v28  ;;  %v351_v37 = vmul.f32 %v3323_v8, %v108_v28 }
  0xa2   :  { %v2603_v41 = vpack.c.bf16 %v829_v31, %v827_v30  ;;  %v2605_v42 = vpack.c.bf16 %v828_v33, %v826_v32 }
  0xa3   :  { %v508_v39 = vpop.permute.xlu1 %507  ;;  %v503_v40 = vpop.permute.xlu0 %502 }
  0xa4   :  { %v736_v43 = vadd.f32 %v508_v39, %v352_v34  ;;  %v737_v44 = vadd.f32 %v508_v39, %v353_v35  ;;  %v734_v45 = vadd.f32 %v503_v40, %v350_v36  ;;  %v735_v46 = vadd.f32 %v503_v40, %v351_v37  ;;  %232 = vperm.xlu1 %2999, %v74_v29   ;;  %v485_v37 = vld [vmem:[%s4173_s2 + $0x158] sm:$0xff] }
  0xa5   :  { %227 = vperm.xlu0 %2998, %v73_v38   ;;  %2604 = vmatprep.subr.bf16.mxu0 %v2603_v41  ;;  %v484_v38 = vld [vmem:[%s4173_s2 + $0x150] sm:$0xff] }
  0xa6   :  { %v832_v48 = vmax.f32 %v736_v43, 0.0  ;;  %v833_v49 = vmax.f32 %v737_v44, 0.0  ;;  %v830_v50 = vmax.f32 %v734_v45, 0.0  ;;  %v831_v51 = vmax.f32 %v735_v46, 0.0  ;;  %2606 = vmatpush1.bf16.msra.mxu0 %v2605_v42 }
  0xa7   :  { %v123_v53 = vpop.permute.xlu1 %122  ;;  %v118_v54 = vpop.permute.xlu0 %117 }
  0xa8   :  { %697 = vperm.xlu1 %2999, %v483_v47   ;;  %v2607_v55 = vpack.c.bf16 %v833_v49, %v831_v51  ;;  %v2609_v56 = vpack.c.bf16 %v832_v48, %v830_v50  ;;  %v356_v57 = vmul.f32 %v3319_v7, %v123_v53  ;;  %v357_v58 = vmul.f32 %v3323_v8, %v123_v53  ;;  %v92_v47 = vld [vmem:[%s4172_s1 + $0x168] sm:$0xff]  ;;  %v91_v48 = vld [vmem:[%s4172_s1 + $0x160] sm:$0xff] }
  0xa9   :  { %692 = vperm.xlu0 %2998, %v482_v52   ;;  %v354_v59 = vmul.f32 %v3319_v7, %v118_v54  ;;  %v355_v60 = vmul.f32 %v3323_v8, %v118_v54 }
  0xaa   :  { %2608 = vmatprep.subr.bf16.mxu0 %v2607_v55 }
  0xab   :  { %v518_v0 = vpop.permute.xlu1 %517  ;;  %v513_v2 = vpop.permute.xlu0 %512  ;;  %2610 = vmatpush1.bf16.msra.mxu0 %v2609_v56 }
  0xac   :  { %v740_v3 = vadd.f32 %v518_v0, %v356_v57  ;;  %v741_v6 = vadd.f32 %v518_v0, %v357_v58  ;;  %v738_v9 = vadd.f32 %v513_v2, %v354_v59  ;;  %v739_v10 = vadd.f32 %v513_v2, %v355_v60  ;;  %312 = vperm.xlu1 %2999, %v90_v61   ;;  %v471_v59 = vld [vmem:[%s4173_s2 + $0xe8] sm:$0xff]  ;;  %v470_v60 = vld [vmem:[%s4173_s2 + $0xe0] sm:$0xff] }
  0xad   :  { %307 = vperm.xlu0 %2998, %v89_v63  }
  0xae   :  { %v836_v11 = vmax.f32 %v740_v3, 0.0  ;;  %v837_v12 = vmax.f32 %v741_v6, 0.0  ;;  %v834_v13 = vmax.f32 %v738_v9, 0.0  ;;  %v835_v14 = vmax.f32 %v739_v10, 0.0 }
  0xaf   :  { %v133_v17 = vpop.permute.xlu1 %132  ;;  %v128_v18 = vpop.permute.xlu0 %127 }
  0xb0   :  { %627 = vperm.xlu1 %2999, %v469_v15   ;;  %v2611_v19 = vpack.c.bf16 %v837_v12, %v835_v14  ;;  %v2613_v20 = vpack.c.bf16 %v836_v11, %v834_v13  ;;  %v360_v21 = vmul.f32 %v3319_v7, %v133_v17  ;;  %v361_v22 = vmul.f32 %v3323_v8, %v133_v17  ;;  %v78_v11 = vld [vmem:[%s4172_s1 + $0xf8] sm:$0xff]  ;;  %v77_v12 = vld [vmem:[%s4172_s1 + $0xf0] sm:$0xff] }
  0xb1   :  { %622 = vperm.xlu0 %2998, %v468_v16   ;;  %v358_v23 = vmul.f32 %v3319_v7, %v128_v18  ;;  %v359_v24 = vmul.f32 %v3323_v8, %v128_v18 }
  0xb2   :  { %2612 = vmatprep.subr.bf16.mxu0 %v2611_v19 }
  0xb3   :  { %v528_v27 = vpop.permute.xlu1 %527  ;;  %v523_v28 = vpop.permute.xlu0 %522  ;;  %2614 = vmatpush1.bf16.msra.mxu0 %v2613_v20 }
  0xb4   :  { %v744_v29 = vadd.f32 %v528_v27, %v360_v21  ;;  %v745_v30 = vadd.f32 %v528_v27, %v361_v22  ;;  %v742_v31 = vadd.f32 %v523_v28, %v358_v23  ;;  %v743_v32 = vadd.f32 %v523_v28, %v359_v24  ;;  %242 = vperm.xlu1 %2999, %v76_v25   ;;  %v487_v23 = vld [vmem:[%s4173_s2 + $0x168] sm:$0xff]  ;;  %v486_v24 = vld [vmem:[%s4173_s2 + $0x160] sm:$0xff] }
  0xb5   :  { %237 = vperm.xlu0 %2998, %v75_v26  }
  0xb6   :  { %v840_v33 = vmax.f32 %v744_v29, 0.0  ;;  %v841_v34 = vmax.f32 %v745_v30, 0.0  ;;  %v838_v35 = vmax.f32 %v742_v31, 0.0  ;;  %v839_v36 = vmax.f32 %v743_v32, 0.0 }
  0xb7   :  { %v143_v39 = vpop.permute.xlu1 %142  ;;  %v138_v40 = vpop.permute.xlu0 %137 }
  0xb8   :  { %707 = vperm.xlu1 %2999, %v485_v37   ;;  %v2615_v41 = vpack.c.bf16 %v841_v34, %v839_v36  ;;  %v2617_v42 = vpack.c.bf16 %v840_v33, %v838_v35  ;;  %v364_v43 = vmul.f32 %v3319_v7, %v143_v39  ;;  %v365_v44 = vmul.f32 %v3323_v8, %v143_v39  ;;  %v94_v33 = vld [vmem:[%s4172_s1 + $0x178] sm:$0xff]  ;;  %v93_v34 = vld [vmem:[%s4172_s1 + $0x170] sm:$0xff] }
  0xb9   :  { %702 = vperm.xlu0 %2998, %v484_v38   ;;  %v362_v45 = vmul.f32 %v3319_v7, %v138_v40  ;;  %v363_v46 = vmul.f32 %v3323_v8, %v138_v40 }
  0xba   :  { %2616 = vmatprep.subr.bf16.mxu0 %v2615_v41 }
  0xbb   :  { %v538_v49 = vpop.permute.xlu1 %537  ;;  %v533_v50 = vpop.permute.xlu0 %532  ;;  %2618 = vmatpush1.bf16.msra.mxu0 %v2617_v42 }
  0xbc   :  { %v748_v51 = vadd.f32 %v538_v49, %v364_v43  ;;  %v749_v52 = vadd.f32 %v538_v49, %v365_v44  ;;  %v746_v53 = vadd.f32 %v533_v50, %v362_v45  ;;  %v747_v54 = vadd.f32 %v533_v50, %v363_v46  ;;  %322 = vperm.xlu1 %2999, %v92_v47   ;;  %v473_v45 = vld [vmem:[%s4173_s2 + $0xf8] sm:$0xff]  ;;  %v472_v46 = vld [vmem:[%s4173_s2 + $0xf0] sm:$0xff] }
  0xbd   :  { %317 = vperm.xlu0 %2998, %v91_v48  }
  0xbe   :  { %v844_v55 = vmax.f32 %v748_v51, 0.0  ;;  %v845_v56 = vmax.f32 %v749_v52, 0.0  ;;  %v842_v57 = vmax.f32 %v746_v53, 0.0  ;;  %v843_v58 = vmax.f32 %v747_v54, 0.0 }
  0xbf   :  { %v153_v61 = vpop.permute.xlu1 %152  ;;  %v148_v63 = vpop.permute.xlu0 %147 }
  0xc0   :  { %637 = vperm.xlu1 %2999, %v471_v59   ;;  %v2619_v0 = vpack.c.bf16 %v845_v56, %v843_v58  ;;  %v2621_v2 = vpack.c.bf16 %v844_v55, %v842_v57  ;;  %v368_v3 = vmul.f32 %v3319_v7, %v153_v61  ;;  %v369_v6 = vmul.f32 %v3323_v8, %v153_v61  ;;  %v489_v55 = vld [vmem:[%s4173_s2 + $0x178] sm:$0xff]  ;;  %v488_v56 = vld [vmem:[%s4173_s2 + $0x170] sm:$0xff] }
  0xc1   :  { %632 = vperm.xlu0 %2998, %v470_v60   ;;  %v366_v9 = vmul.f32 %v3319_v7, %v148_v63  ;;  %v367_v10 = vmul.f32 %v3323_v8, %v148_v63 }
  0xc2   :  { %2620 = vmatprep.subr.bf16.mxu0 %v2619_v0 }
  0xc3   :  { %v548_v13 = vpop.permute.xlu1 %547  ;;  %v543_v14 = vpop.permute.xlu0 %542  ;;  %2622 = vmatpush1.bf16.msra.mxu0 %v2621_v2 }
  0xc4   :  { %v752_v15 = vadd.f32 %v548_v13, %v368_v3  ;;  %v753_v16 = vadd.f32 %v548_v13, %v369_v6  ;;  %v750_v17 = vadd.f32 %v543_v14, %v366_v9  ;;  %v751_v18 = vadd.f32 %v543_v14, %v367_v10  ;;  %252 = vperm.xlu1 %2999, %v78_v11   ;;  %v1067_v9 = vld [vmem:[%s4175_s4 + $0x8] sm:$0xff]  ;;  %v1066_v10 = vld [vmem:[%s4175_s4] sm:$0xff] }
  0xc5   :  { %247 = vperm.xlu0 %2998, %v77_v12  }
  0xc6   :  { %v848_v19 = vmax.f32 %v752_v15, 0.0  ;;  %v849_v20 = vmax.f32 %v753_v16, 0.0  ;;  %v846_v21 = vmax.f32 %v750_v17, 0.0  ;;  %v847_v22 = vmax.f32 %v751_v18, 0.0  ;;  %v923_v15 = vld [vmem:[%s4174_s3 + $0x8] sm:$0xff]  ;;  %v1069_v16 = vld [vmem:[%s4175_s4 + $0x18] sm:$0xff] }
  0xc7   :  { %v163_v25 = vpop.permute.xlu1 %162  ;;  %v158_v26 = vpop.permute.xlu0 %157  ;;  %v1068_v17 = vld [vmem:[%s4175_s4 + $0x10] sm:$0xff]  ;;  %1418 = vmatprep.mubr.f32.mxu0 %v923_v15 }
  0xc8   :  { %717 = vperm.xlu1 %2999, %v487_v23   ;;  %v2623_v27 = vpack.c.bf16 %v849_v20, %v847_v22  ;;  %v2625_v28 = vpack.c.bf16 %v848_v19, %v846_v21  ;;  %v372_v29 = vmul.f32 %v3319_v7, %v163_v25  ;;  %v373_v30 = vmul.f32 %v3323_v8, %v163_v25  ;;  %v1070_v25 = vld [vmem:[%s4175_s4 + $0x20] sm:$0xff] }
  0xc9   :  { %712 = vperm.xlu0 %2998, %v486_v24   ;;  %v370_v31 = vmul.f32 %v3319_v7, %v158_v26  ;;  %v371_v32 = vmul.f32 %v3323_v8, %v158_v26  ;;  %v1071_v24 = vld [vmem:[%s4175_s4 + $0x28] sm:$0xff]  ;;  %v3053_v26 = vmov 0.0  }
  0xca   :  { %2624 = vmatprep.subr.bf16.mxu0 %v2623_v27  ;;  %1771 = vmatprep.mubr.f32.mxu1 %v3053_v26 }
  0xcb   :  { %v558_v35 = vpop.permute.xlu1 %557  ;;  %v553_v36 = vpop.permute.xlu0 %552  ;;  %2626 = vmatpush1.bf16.msra.mxu0 %v2625_v28 }
  0xcc   :  { %v756_v37 = vadd.f32 %v558_v35, %v372_v29  ;;  %v757_v38 = vadd.f32 %v558_v35, %v373_v30  ;;  %v754_v39 = vadd.f32 %v553_v36, %v370_v31  ;;  %v755_v40 = vadd.f32 %v553_v36, %v371_v32  ;;  %332 = vperm.xlu1 %2999, %v94_v33  }
  0xcd   :  { %327 = vperm.xlu0 %2998, %v93_v34  }
  0xce   :  { %v852_v41 = vmax.f32 %v756_v37, 0.0  ;;  %v853_v42 = vmax.f32 %v757_v38, 0.0  ;;  %v850_v43 = vmax.f32 %v754_v39, 0.0  ;;  %v851_v44 = vmax.f32 %v755_v40, 0.0  ;;  %v1073_v37 = vld [vmem:[%s4175_s4 + $0x38] sm:$0xff]  ;;  %v1072_v38 = vld [vmem:[%s4175_s4 + $0x30] sm:$0xff] }
  0xcf   :  { %v173_v47 = vpop.permute.xlu1 %172  ;;  %v168_v48 = vpop.permute.xlu0 %167 }
  0xd0   :  { %647 = vperm.xlu1 %2999, %v473_v45   ;;  %v2627_v49 = vpack.c.bf16 %v853_v42, %v851_v44  ;;  %v2629_v50 = vpack.c.bf16 %v852_v41, %v850_v43  ;;  %v376_v51 = vmul.f32 %v3319_v7, %v173_v47  ;;  %v377_v52 = vmul.f32 %v3323_v8, %v173_v47  ;;  %v1075_v47 = vld [vmem:[%s4175_s4 + $0x48] sm:$0xff] }
  0xd1   :  { %642 = vperm.xlu0 %2998, %v472_v46   ;;  %v374_v53 = vmul.f32 %v3319_v7, %v168_v48  ;;  %v375_v54 = vmul.f32 %v3323_v8, %v168_v48  ;;  %v1074_v48 = vld [vmem:[%s4175_s4 + $0x40] sm:$0xff] }
  0xd2   :  { %2628 = vmatprep.subr.bf16.mxu0 %v2627_v49 }
  0xd3   :  { %v568_v57 = vpop.permute.xlu1 %567  ;;  %v563_v58 = vpop.permute.xlu0 %562  ;;  %2630 = vmatpush1.bf16.msra.mxu0 %v2629_v50 }
  0xd4   :  { %v760_v59 = vadd.f32 %v568_v57, %v376_v51  ;;  %v761_v60 = vadd.f32 %v568_v57, %v377_v52  ;;  %v758_v61 = vadd.f32 %v563_v58, %v374_v53  ;;  %v759_v63 = vadd.f32 %v563_v58, %v375_v54  ;;  %727 = vperm.xlu1 %2999, %v489_v55   ;;  %v1077_v55 = vld [vmem:[%s4175_s4 + $0x58] sm:$0xff] }
  0xd5   :  { %722 = vperm.xlu0 %2998, %v488_v56   ;;  %v1076_v56 = vld [vmem:[%s4175_s4 + $0x50] sm:$0xff] }
  0xd6   :  { %v856_v0 = vmax.f32 %v760_v59, 0.0  ;;  %v857_v2 = vmax.f32 %v761_v60, 0.0  ;;  %v854_v3 = vmax.f32 %v758_v61, 0.0  ;;  %v855_v6 = vmax.f32 %v759_v63, 0.0 }
  0xd7   :  { %v183_v11 = vpop.permute.xlu1 %182  ;;  %v178_v12 = vpop.permute.xlu0 %177 }
  0xd8   :  { %1121 = vperm.xlu1 %2999, %v1067_v9   ;;  %v2631_v13 = vpack.c.bf16 %v857_v2, %v855_v6  ;;  %v2633_v14 = vpack.c.bf16 %v856_v0, %v854_v3  ;;  %v380_v20 = vmul.f32 %v3319_v7, %v183_v11  ;;  %v381_v21 = vmul.f32 %v3323_v8, %v183_v11  ;;  %v1079_v11 = vld [vmem:[%s4175_s4 + $0x68] sm:$0xff] }
  0xd9   :  { %1116 = vperm.xlu0 %2998, %v1066_v10   ;;  %v378_v22 = vmul.f32 %v3319_v7, %v178_v12  ;;  %v379_v23 = vmul.f32 %v3323_v8, %v178_v12  ;;  %v1078_v12 = vld [vmem:[%s4175_s4 + $0x60] sm:$0xff] }
  0xda   :  { %2632 = vmatprep.subr.bf16.mxu0 %v2631_v13 }
  0xdb   :  { %v263_v18 = vpop.permute.xlu1 %262  ;;  %v258_v19 = vpop.permute.xlu0 %257  ;;  %2634 = vmatpush1.bf16.msra.mxu0 %v2633_v14 }
  0xdc   :  { %1131 = vperm.xlu1 %2999, %v1069_v16   ;;  %v412_v43 = vmul.f32 %v3319_v7, %v263_v18  ;;  %v413_v44 = vmul.f32 %v3323_v8, %v263_v18  ;;  %v410_v45 = vmul.f32 %v3319_v7, %v258_v19  ;;  %v411_v46 = vmul.f32 %v3323_v8, %v258_v19 }
  0xdd   :  { %1126 = vperm.xlu0 %2998, %v1068_v17  }
  0xdf   :  { %v578_v27 = vpop.permute.xlu1 %577  ;;  %v573_v28 = vpop.permute.xlu0 %572 }
  0xe0   :  { %v764_v29 = vadd.f32 %v578_v27, %v380_v20  ;;  %v765_v30 = vadd.f32 %v578_v27, %v381_v21  ;;  %v762_v31 = vadd.f32 %v573_v28, %v378_v22  ;;  %v763_v32 = vadd.f32 %v573_v28, %v379_v23  ;;  %1141 = vperm.xlu1 %2999, %v1071_v24   ;;  %v1081_v23 = vld [vmem:[%s4175_s4 + $0x78] sm:$0xff]  ;;  %v1080_v24 = vld [vmem:[%s4175_s4 + $0x70] sm:$0xff] }
  0xe1   :  { %1136 = vperm.xlu0 %2998, %v1070_v25  }
  0xe2   :  { %v860_v33 = vmax.f32 %v764_v29, 0.0  ;;  %v861_v34 = vmax.f32 %v765_v30, 0.0  ;;  %v858_v35 = vmax.f32 %v762_v31, 0.0  ;;  %v859_v36 = vmax.f32 %v763_v32, 0.0 }
  0xe3   :  { %v193_v39 = vpop.permute.xlu1 %192  ;;  %v188_v40 = vpop.permute.xlu0 %187 }
  0xe4   :  { %1151 = vperm.xlu1 %2999, %v1073_v37   ;;  %v2635_v41 = vpack.c.bf16 %v861_v34, %v859_v36  ;;  %v2637_v42 = vpack.c.bf16 %v860_v33, %v858_v35  ;;  %v384_v3 = vmul.f32 %v3319_v7, %v193_v39  ;;  %v385_v6 = vmul.f32 %v3323_v8, %v193_v39  ;;  %v1083_v34 = vld [vmem:[%s4175_s4 + $0x88] sm:$0xff]  ;;  %v1082_v35 = vld [vmem:[%s4175_s4 + $0x80] sm:$0xff] }
  0xe5   :  { %1146 = vperm.xlu0 %2998, %v1072_v38   ;;  %v382_v9 = vmul.f32 %v3319_v7, %v188_v40  ;;  %v383_v10 = vmul.f32 %v3323_v8, %v188_v40 }
  0xe6   :  { %2636 = vmatprep.subr.bf16.mxu0 %v2635_v41 }
  0xe7   :  { %v658_v49 = vpop.permute.xlu1 %657  ;;  %v653_v50 = vpop.permute.xlu0 %652  ;;  %2638 = vmatpush1.bf16.msra.mxu0 %v2637_v42 }
  0xe8   :  { %v796_v51 = vadd.f32 %v658_v49, %v412_v43  ;;  %v794_v52 = vadd.f32 %v653_v50, %v410_v45  ;;  %v795_v53 = vadd.f32 %v653_v50, %v411_v46  ;;  %v797_v54 = vadd.f32 %v658_v49, %v413_v44  ;;  %1161 = vperm.xlu1 %2999, %v1075_v47   ;;  %v1085_v46 = vld [vmem:[%s4175_s4 + $0x98] sm:$0xff]  ;;  %v1084_v47 = vld [vmem:[%s4175_s4 + $0x90] sm:$0xff] }
  0xe9   :  { %1156 = vperm.xlu0 %2998, %v1074_v48  }
  0xea   :  { %v891_v57 = vmax.f32 %v795_v53, 0.0  ;;  %v893_v58 = vmax.f32 %v797_v54, 0.0  ;;  %v890_v59 = vmax.f32 %v794_v52, 0.0  ;;  %v892_v60 = vmax.f32 %v796_v51, 0.0 }
  0xeb   :  { %v273_v61 = vpop.permute.xlu1 %272  ;;  %v268_v63 = vpop.permute.xlu0 %267 }
  0xec   :  { %1171 = vperm.xlu1 %2999, %v1077_v55   ;;  %v2667_v0 = vpack.c.bf16 %v893_v58, %v891_v57  ;;  %v2669_v2 = vpack.c.bf16 %v892_v60, %v890_v59  ;;  %v416_v30 = vmul.f32 %v3319_v7, %v273_v61  ;;  %v417_v31 = vmul.f32 %v3323_v8, %v273_v61  ;;  %v1086_v57 = vld [vmem:[%s4175_s4 + $0xa0] sm:$0xff] }
  0xed   :  { %1166 = vperm.xlu0 %2998, %v1076_v56   ;;  %v414_v32 = vmul.f32 %v3319_v7, %v268_v63  ;;  %v415_v33 = vmul.f32 %v3323_v8, %v268_v63  ;;  %v1087_v56 = vld [vmem:[%s4175_s4 + $0xa8] sm:$0xff] }
  0xee   :  { %2668 = vmatprep.subr.bf16.mxu1 %v2667_v0 }
  0xef   :  { %v588_v13 = vpop.permute.xlu1 %587  ;;  %v583_v14 = vpop.permute.xlu0 %582  ;;  %2670 = vmatpush1.bf16.msra.mxu1 %v2669_v2 }
  0xf0   :  { %v768_v15 = vadd.f32 %v588_v13, %v384_v3  ;;  %v769_v16 = vadd.f32 %v588_v13, %v385_v6  ;;  %v766_v17 = vadd.f32 %v583_v14, %v382_v9  ;;  %v767_v18 = vadd.f32 %v583_v14, %v383_v10  ;;  %1181 = vperm.xlu1 %2999, %v1079_v11   ;;  %v1089_v10 = vld [vmem:[%s4175_s4 + $0xb8] sm:$0xff]  ;;  %v1088_v11 = vld [vmem:[%s4175_s4 + $0xb0] sm:$0xff] }
  0xf1   :  { %1176 = vperm.xlu0 %2998, %v1078_v12  }
  0xf2   :  { %v864_v19 = vmax.f32 %v768_v15, 0.0  ;;  %v865_v20 = vmax.f32 %v769_v16, 0.0  ;;  %v862_v21 = vmax.f32 %v766_v17, 0.0  ;;  %v863_v22 = vmax.f32 %v767_v18, 0.0 }
  0xf3   :  { %v203_v25 = vpop.permute.xlu1 %202  ;;  %v198_v27 = vpop.permute.xlu0 %197 }
  0xf4   :  { %1191 = vperm.xlu1 %2999, %v1081_v23   ;;  %v2639_v28 = vpack.c.bf16 %v865_v20, %v863_v22  ;;  %v2641_v29 = vpack.c.bf16 %v864_v19, %v862_v21  ;;  %v388_v52 = vmul.f32 %v3319_v7, %v203_v25  ;;  %v389_v53 = vmul.f32 %v3323_v8, %v203_v25  ;;  %v1091_v20 = vld [vmem:[%s4175_s4 + $0xc8] sm:$0xff]  ;;  %v1090_v21 = vld [vmem:[%s4175_s4 + $0xc0] sm:$0xff] }
  0xf5   :  { %1186 = vperm.xlu0 %2998, %v1080_v24   ;;  %v386_v54 = vmul.f32 %v3319_v7, %v198_v27  ;;  %v387_v55 = vmul.f32 %v3323_v8, %v198_v27 }
  0xf6   :  { %2640 = vmatprep.subr.bf16.mxu0 %v2639_v28 }
  0xf7   :  { %v668_v36 = vpop.permute.xlu1 %667  ;;  %v663_v37 = vpop.permute.xlu0 %662  ;;  %2642 = vmatpush1.bf16.msra.mxu0 %v2641_v29 }
  0xf8   :  { %v800_v38 = vadd.f32 %v668_v36, %v416_v30  ;;  %v801_v39 = vadd.f32 %v668_v36, %v417_v31  ;;  %v798_v40 = vadd.f32 %v663_v37, %v414_v32  ;;  %v799_v41 = vadd.f32 %v663_v37, %v415_v33  ;;  %1201 = vperm.xlu1 %2999, %v1083_v34   ;;  %v1093_v33 = vld [vmem:[%s4175_s4 + $0xd8] sm:$0xff]  ;;  %v1092_v34 = vld [vmem:[%s4175_s4 + $0xd0] sm:$0xff] }
  0xf9   :  { %1196 = vperm.xlu0 %2998, %v1082_v35  }
  0xfa   :  { %v896_v42 = vmax.f32 %v800_v38, 0.0  ;;  %v897_v43 = vmax.f32 %v801_v39, 0.0  ;;  %v894_v44 = vmax.f32 %v798_v40, 0.0  ;;  %v895_v45 = vmax.f32 %v799_v41, 0.0 }
  0xfb   :  { %v283_v48 = vpop.permute.xlu1 %282  ;;  %v278_v49 = vpop.permute.xlu0 %277 }
  0xfc   :  { %1211 = vperm.xlu1 %2999, %v1085_v46   ;;  %v2671_v50 = vpack.c.bf16 %v897_v43, %v895_v45  ;;  %v2673_v51 = vpack.c.bf16 %v896_v42, %v894_v44  ;;  %v420_v16 = vmul.f32 %v3319_v7, %v283_v48  ;;  %v421_v17 = vmul.f32 %v3323_v8, %v283_v48  ;;  %v1095_v43 = vld [vmem:[%s4175_s4 + $0xe8] sm:$0xff]  ;;  %v1094_v44 = vld [vmem:[%s4175_s4 + $0xe0] sm:$0xff] }
  0xfd   :  { %1206 = vperm.xlu0 %2998, %v1084_v47   ;;  %v418_v18 = vmul.f32 %v3319_v7, %v278_v49  ;;  %v419_v19 = vmul.f32 %v3323_v8, %v278_v49 }
  0xfe   :  { %2672 = vmatprep.subr.bf16.mxu1 %v2671_v50 }
  0xff   :  { %v598_v58 = vpop.permute.xlu1 %597  ;;  %v593_v59 = vpop.permute.xlu0 %592  ;;  %2674 = vmatpush1.bf16.msra.mxu1 %v2673_v51 }
 0x100   :  { %v772_v60 = vadd.f32 %v598_v58, %v388_v52  ;;  %v773_v61 = vadd.f32 %v598_v58, %v389_v53  ;;  %v770_v63 = vadd.f32 %v593_v59, %v386_v54  ;;  %v771_v0 = vadd.f32 %v593_v59, %v387_v55  ;;  %1221 = vperm.xlu1 %2999, %v1087_v56   ;;  %v1097_v55 = vld [vmem:[%s4175_s4 + $0xf8] sm:$0xff]  ;;  %v1096_v56 = vld [vmem:[%s4175_s4 + $0xf0] sm:$0xff] }
 0x101   :  { %1216 = vperm.xlu0 %2998, %v1086_v57  }
 0x102   :  { %v868_v2 = vmax.f32 %v772_v60, 0.0  ;;  %v869_v3 = vmax.f32 %v773_v61, 0.0  ;;  %v866_v6 = vmax.f32 %v770_v63, 0.0  ;;  %v867_v9 = vmax.f32 %v771_v0, 0.0 }
 0x103   :  { %v213_v12 = vpop.permute.xlu1 %212  ;;  %v208_v13 = vpop.permute.xlu0 %207 }
 0x104   :  { %1231 = vperm.xlu1 %2999, %v1089_v10   ;;  %v2643_v14 = vpack.c.bf16 %v869_v3, %v867_v9  ;;  %v2645_v15 = vpack.c.bf16 %v868_v2, %v866_v6  ;;  %v392_v39 = vmul.f32 %v3319_v7, %v213_v12  ;;  %v393_v40 = vmul.f32 %v3323_v8, %v213_v12  ;;  %v1099_v3 = vld [vmem:[%s4175_s4 + $0x108] sm:$0xff]  ;;  %v1098_v6 = vld [vmem:[%s4175_s4 + $0x100] sm:$0xff] }
 0x105   :  { %1226 = vperm.xlu0 %2998, %v1088_v11   ;;  %v390_v41 = vmul.f32 %v3319_v7, %v208_v13  ;;  %v391_v42 = vmul.f32 %v3323_v8, %v208_v13 }
 0x106   :  { %2644 = vmatprep.subr.bf16.mxu0 %v2643_v14 }
 0x107   :  { %v678_v22 = vpop.permute.xlu1 %677  ;;  %v673_v23 = vpop.permute.xlu0 %672  ;;  %2646 = vmatpush1.bf16.msra.mxu0 %v2645_v15 }
 0x108   :  { %v804_v24 = vadd.f32 %v678_v22, %v420_v16  ;;  %v805_v25 = vadd.f32 %v678_v22, %v421_v17  ;;  %v802_v27 = vadd.f32 %v673_v23, %v418_v18  ;;  %v803_v28 = vadd.f32 %v673_v23, %v419_v19  ;;  %1241 = vperm.xlu1 %2999, %v1091_v20   ;;  %v1101_v19 = vld [vmem:[%s4175_s4 + $0x118] sm:$0xff]  ;;  %v1100_v20 = vld [vmem:[%s4175_s4 + $0x110] sm:$0xff] }
 0x109   :  { %1236 = vperm.xlu0 %2998, %v1090_v21  }
 0x10a   :  { %v900_v29 = vmax.f32 %v804_v24, 0.0  ;;  %v901_v30 = vmax.f32 %v805_v25, 0.0  ;;  %v898_v31 = vmax.f32 %v802_v27, 0.0  ;;  %v899_v32 = vmax.f32 %v803_v28, 0.0  ;;  %v1103_v28 = vld [vmem:[%s4175_s4 + $0x128] sm:$0xff] }
 0x10b   :  { %v293_v35 = vpop.permute.xlu1 %292  ;;  %v288_v36 = vpop.permute.xlu0 %287 }
 0x10c   :  { %1251 = vperm.xlu1 %2999, %v1093_v33   ;;  %v2675_v37 = vpack.c.bf16 %v901_v30, %v899_v32  ;;  %v2677_v38 = vpack.c.bf16 %v900_v29, %v898_v31  ;;  %v424_v61 = vmul.f32 %v3319_v7, %v293_v35  ;;  %v425_v63 = vmul.f32 %v3323_v8, %v293_v35  ;;  %v1102_v29 = vld [vmem:[%s4175_s4 + $0x120] sm:$0xff] }
 0x10d   :  { %1246 = vperm.xlu0 %2998, %v1092_v34   ;;  %v422_v0 = vmul.f32 %v3319_v7, %v288_v36  ;;  %v423_v2 = vmul.f32 %v3323_v8, %v288_v36 }
 0x10e   :  { %2676 = vmatprep.subr.bf16.mxu1 %v2675_v37 }
 0x10f   :  { %v608_v45 = vpop.permute.xlu1 %607  ;;  %v603_v46 = vpop.permute.xlu0 %602  ;;  %2678 = vmatpush1.bf16.msra.mxu1 %v2677_v38 }
 0x110   :  { %v776_v47 = vadd.f32 %v608_v45, %v392_v39  ;;  %v777_v48 = vadd.f32 %v608_v45, %v393_v40  ;;  %v774_v49 = vadd.f32 %v603_v46, %v390_v41  ;;  %v775_v50 = vadd.f32 %v603_v46, %v391_v42  ;;  %1261 = vperm.xlu1 %2999, %v1095_v43   ;;  %v1105_v40 = vld [vmem:[%s4175_s4 + $0x138] sm:$0xff]  ;;  %v1104_v41 = vld [vmem:[%s4175_s4 + $0x130] sm:$0xff] }
 0x111   :  { %1256 = vperm.xlu0 %2998, %v1094_v44  }
 0x112   :  { %v872_v51 = vmax.f32 %v776_v47, 0.0  ;;  %v873_v52 = vmax.f32 %v777_v48, 0.0  ;;  %v870_v53 = vmax.f32 %v774_v49, 0.0  ;;  %v871_v54 = vmax.f32 %v775_v50, 0.0  ;;  %v1107_v50 = vld [vmem:[%s4175_s4 + $0x148] sm:$0xff] }
 0x113   :  { %v223_v57 = vpop.permute.xlu1 %222  ;;  %v218_v58 = vpop.permute.xlu0 %217 }
 0x114   :  { %1271 = vperm.xlu1 %2999, %v1097_v55   ;;  %v2647_v59 = vpack.c.bf16 %v873_v52, %v871_v54  ;;  %v2649_v60 = vpack.c.bf16 %v872_v51, %v870_v53  ;;  %v396_v25 = vmul.f32 %v3319_v7, %v223_v57  ;;  %v397_v27 = vmul.f32 %v3323_v8, %v223_v57  ;;  %v1106_v51 = vld [vmem:[%s4175_s4 + $0x140] sm:$0xff] }
 0x115   :  { %1266 = vperm.xlu0 %2998, %v1096_v56   ;;  %v394_v30 = vmul.f32 %v3319_v7, %v218_v58  ;;  %v395_v31 = vmul.f32 %v3323_v8, %v218_v58 }
 0x116   :  { %2648 = vmatprep.subr.bf16.mxu0 %v2647_v59 }
 0x117   :  { %v688_v9 = vpop.permute.xlu1 %687  ;;  %v683_v10 = vpop.permute.xlu0 %682  ;;  %2650 = vmatpush1.bf16.msra.mxu0 %v2649_v60 }
 0x118   :  { %v808_v11 = vadd.f32 %v688_v9, %v424_v61  ;;  %v809_v12 = vadd.f32 %v688_v9, %v425_v63  ;;  %v806_v13 = vadd.f32 %v683_v10, %v422_v0  ;;  %v807_v14 = vadd.f32 %v683_v10, %v423_v2  ;;  %1281 = vperm.xlu1 %2999, %v1099_v3   ;;  %v1109_v63 = vld [vmem:[%s4175_s4 + $0x158] sm:$0xff]  ;;  %v1108_v3 = vld [vmem:[%s4175_s4 + $0x150] sm:$0xff] }
 0x119   :  { %1276 = vperm.xlu0 %2998, %v1098_v6  }
 0x11a   :  { %v904_v15 = vmax.f32 %v808_v11, 0.0  ;;  %v905_v16 = vmax.f32 %v809_v12, 0.0  ;;  %v902_v17 = vmax.f32 %v806_v13, 0.0  ;;  %v903_v18 = vmax.f32 %v807_v14, 0.0 }
 0x11b   :  { %v303_v21 = vpop.permute.xlu1 %302  ;;  %v298_v22 = vpop.permute.xlu0 %297 }
 0x11c   :  { %1291 = vperm.xlu1 %2999, %v1101_v19   ;;  %v2679_v23 = vpack.c.bf16 %v905_v16, %v903_v18  ;;  %v2681_v24 = vpack.c.bf16 %v904_v15, %v902_v17  ;;  %v428_v47 = vmul.f32 %v3319_v7, %v303_v21  ;;  %v429_v48 = vmul.f32 %v3323_v8, %v303_v21  ;;  %v1111_v16 = vld [vmem:[%s4175_s4 + $0x168] sm:$0xff]  ;;  %v1110_v17 = vld [vmem:[%s4175_s4 + $0x160] sm:$0xff] }
 0x11d   :  { %1286 = vperm.xlu0 %2998, %v1100_v20   ;;  %v426_v52 = vmul.f32 %v3319_v7, %v298_v22  ;;  %v427_v53 = vmul.f32 %v3323_v8, %v298_v22 }
 0x11e   :  { %2680 = vmatprep.subr.bf16.mxu1 %v2679_v23 }
 0x11f   :  { %v618_v32 = vpop.permute.xlu1 %617  ;;  %v613_v35 = vpop.permute.xlu0 %612  ;;  %2682 = vmatpush1.bf16.msra.mxu1 %v2681_v24 }
 0x120   :  { %v780_v33 = vadd.f32 %v618_v32, %v396_v25  ;;  %v781_v34 = vadd.f32 %v618_v32, %v397_v27  ;;  %v778_v36 = vadd.f32 %v613_v35, %v394_v30  ;;  %v779_v37 = vadd.f32 %v613_v35, %v395_v31  ;;  %1301 = vperm.xlu1 %2999, %v1103_v28   ;;  %v1112_v30 = vld [vmem:[%s4175_s4 + $0x170] sm:$0xff] }
 0x121   :  { %1296 = vperm.xlu0 %2998, %v1102_v29   ;;  %v1113_v29 = vld [vmem:[%s4175_s4 + $0x178] sm:$0xff] }
 0x122   :  { %v876_v38 = vmax.f32 %v780_v33, 0.0  ;;  %v877_v39 = vmax.f32 %v781_v34, 0.0  ;;  %v874_v42 = vmax.f32 %v778_v36, 0.0  ;;  %v875_v43 = vmax.f32 %v779_v37, 0.0 }
 0x123   :  { %v233_v44 = vpop.permute.xlu1 %232 }
 0x124   :  { %v228_v45 = vpop.permute.xlu0 %227  ;;  %1311 = vperm.xlu1 %2999, %v1105_v40   ;;  %v2651_v46 = vpack.c.bf16 %v877_v39, %v875_v43  ;;  %v2653_v49 = vpack.c.bf16 %v876_v38, %v874_v42  ;;  %v400_v12 = vmul.f32 %v3319_v7, %v233_v44  ;;  %v401_v13 = vmul.f32 %v3323_v8, %v233_v44  ;;  %v2397_v39 = vld [vmem:[#allocation2] sm:$0x1] }
 0x125   :  { %1306 = vperm.xlu0 %2998, %v1104_v41   ;;  %v398_v14 = vmul.f32 %v3319_v7, %v228_v45  ;;  %v399_v15 = vmul.f32 %v3323_v8, %v228_v45 }
 0x126   :  { %2652 = vmatprep.subr.bf16.mxu0 %v2651_v46 }
 0x127   :  { %v698_v54 = vpop.permute.xlu1 %697  ;;  %2654 = vmatpush1.bf16.msra.mxu0 %v2653_v49 }
 0x128   :  { %v812_v55 = vadd.f32 %v698_v54, %v428_v47  ;;  %v813_v56 = vadd.f32 %v698_v54, %v429_v48  ;;  %v693_v57 = vpop.permute.xlu0 %692  ;;  %1321 = vperm.xlu1 %2999, %v1107_v50  }
 0x129   :  { %v810_v58 = vadd.f32 %v693_v57, %v426_v52  ;;  %v811_v59 = vadd.f32 %v693_v57, %v427_v53  ;;  %1316 = vperm.xlu0 %2998, %v1106_v51  }
 0x12a   :  { %v908_v60 = vmax.f32 %v812_v55, 0.0  ;;  %v909_v61 = vmax.f32 %v813_v56, 0.0 }
 0x12b   :  { %v906_v0 = vmax.f32 %v810_v58, 0.0  ;;  %v907_v2 = vmax.f32 %v811_v59, 0.0  ;;  %v313_v6 = vpop.permute.xlu1 %312 }
 0x12c   :  { %v308_v9 = vpop.permute.xlu0 %307  ;;  %1331 = vperm.xlu1 %2999, %v1109_v63   ;;  %v432_v35 = vmul.f32 %v3319_v7, %v313_v6  ;;  %v433_v36 = vmul.f32 %v3323_v8, %v313_v6 }
 0x12d   :  { %1326 = vperm.xlu0 %2998, %v1108_v3   ;;  %v2683_v10 = vpack.c.bf16 %v909_v61, %v907_v2  ;;  %v2685_v11 = vpack.c.bf16 %v908_v60, %v906_v0  ;;  %v430_v37 = vmul.f32 %v3319_v7, %v308_v9  ;;  %v431_v38 = vmul.f32 %v3323_v8, %v308_v9 }
 0x12f   :  { %2684 = vmatprep.subr.bf16.mxu1 %v2683_v10  ;;  %v628_v18 = vpop.permute.xlu1 %627 }
 0x130   :  { %v623_v19 = vpop.permute.xlu0 %622  ;;  %v784_v20 = vadd.f32 %v628_v18, %v400_v12  ;;  %v785_v21 = vadd.f32 %v628_v18, %v401_v13  ;;  %2686 = vmatpush1.bf16.msra.mxu1 %v2685_v11  ;;  %1341 = vperm.xlu1 %2999, %v1111_v16  }
 0x131   :  { %v782_v22 = vadd.f32 %v623_v19, %v398_v14  ;;  %v783_v23 = vadd.f32 %v623_v19, %v399_v15  ;;  %1336 = vperm.xlu0 %2998, %v1110_v17  }
 0x132   :  { %v880_v24 = vmax.f32 %v784_v20, 0.0  ;;  %v881_v25 = vmax.f32 %v785_v21, 0.0 }
 0x133   :  { %v878_v27 = vmax.f32 %v782_v22, 0.0  ;;  %v879_v28 = vmax.f32 %v783_v23, 0.0  ;;  %v243_v31 = vpop.permute.xlu1 %242 }
 0x134   :  { %v238_v32 = vpop.permute.xlu0 %237  ;;  %1351 = vperm.xlu1 %2999, %v1113_v29   ;;  %v404_v54 = vmul.f32 %v3319_v7, %v243_v31  ;;  %v405_v55 = vmul.f32 %v3323_v8, %v243_v31 }
 0x135   :  { %1346 = vperm.xlu0 %2998, %v1112_v30   ;;  %v2655_v33 = vpack.c.bf16 %v881_v25, %v879_v28  ;;  %v2657_v34 = vpack.c.bf16 %v880_v24, %v878_v27  ;;  %v402_v56 = vmul.f32 %v3319_v7, %v238_v32  ;;  %v403_v57 = vmul.f32 %v3323_v8, %v238_v32 }
 0x137   :  { %2656 = vmatprep.subr.bf16.mxu0 %v2655_v33  ;;  %v708_v40 = vpop.permute.xlu1 %707 }
 0x138   :  { %v703_v41 = vpop.permute.xlu0 %702  ;;  %v816_v42 = vadd.f32 %v708_v40, %v432_v35  ;;  %v817_v43 = vadd.f32 %v708_v40, %v433_v36  ;;  %2658 = vmatpush1.bf16.msra.mxu0 %v2657_v34 }
 0x139   :  { %v814_v44 = vadd.f32 %v703_v41, %v430_v37  ;;  %v815_v45 = vadd.f32 %v703_v41, %v431_v38  ;;  %2400 = vperm.xlu0 %2998, %v2397_v39  }
 0x13a   :  { %v912_v46 = vmax.f32 %v816_v42, 0.0  ;;  %v913_v47 = vmax.f32 %v817_v43, 0.0 }
 0x13b   :  { %v910_v48 = vmax.f32 %v814_v44, 0.0  ;;  %v911_v49 = vmax.f32 %v815_v45, 0.0  ;;  %v323_v50 = vpop.permute.xlu1 %322 }
 0x13c   :  { %v318_v51 = vpop.permute.xlu0 %317  ;;  %v436_v14 = vmul.f32 %v3319_v7, %v323_v50  ;;  %v437_v15 = vmul.f32 %v3323_v8, %v323_v50 }
 0x13d   :  { %v2687_v52 = vpack.c.bf16 %v913_v47, %v911_v49  ;;  %v2689_v53 = vpack.c.bf16 %v912_v46, %v910_v48  ;;  %v434_v16 = vmul.f32 %v3319_v7, %v318_v51  ;;  %v435_v17 = vmul.f32 %v3323_v8, %v318_v51 }
 0x13f   :  { %2688 = vmatprep.subr.bf16.mxu1 %v2687_v52  ;;  %v638_v58 = vpop.permute.xlu1 %637 }
 0x140   :  { %v633_v59 = vpop.permute.xlu0 %632  ;;  %v788_v60 = vadd.f32 %v638_v58, %v404_v54  ;;  %v789_v61 = vadd.f32 %v638_v58, %v405_v55  ;;  %2690 = vmatpush1.bf16.msra.mxu1 %v2689_v53 }
 0x141   :  { %v786_v63 = vadd.f32 %v633_v59, %v402_v56  ;;  %v787_v0 = vadd.f32 %v633_v59, %v403_v57 }
 0x142   :  { %v884_v2 = vmax.f32 %v788_v60, 0.0  ;;  %v885_v3 = vmax.f32 %v789_v61, 0.0 }
 0x143   :  { %v882_v6 = vmax.f32 %v786_v63, 0.0  ;;  %v883_v9 = vmax.f32 %v787_v0, 0.0  ;;  %v253_v10 = vpop.permute.xlu1 %252 }
 0x144   :  { %v248_v11 = vpop.permute.xlu0 %247  ;;  %v408_v33 = vmul.f32 %v3319_v7, %v253_v10  ;;  %v409_v34 = vmul.f32 %v3323_v8, %v253_v10  ;;  %v927_v10 = vld [vmem:[%s4174_s3 + $0x28] sm:$0xff] }
 0x145   :  { %v2659_v12 = vpack.c.bf16 %v885_v3, %v883_v9  ;;  %v2661_v13 = vpack.c.bf16 %v884_v2, %v882_v6  ;;  %v406_v35 = vmul.f32 %v3319_v7, %v248_v11  ;;  %v407_v36 = vmul.f32 %v3323_v8, %v248_v11  ;;  %v926_v2 = vld [vmem:[%s4174_s3 + $0x20] sm:$0xff]  ;;  %v924_v3 = vld [vmem:[%s4174_s3 + $0x10] sm:$0xff]  ;;  %v925_v6 = vld [vmem:[%s4174_s3 + $0x18] sm:$0xff] }
 0x146   :  { %v929_v9 = vld [vmem:[%s4174_s3 + $0x38] sm:$0xff]  ;;  %v928_v11 = vld [vmem:[%s4174_s3 + $0x30] sm:$0xff] }
 0x147   :  { %2660 = vmatprep.subr.bf16.mxu0 %v2659_v12  ;;  %v718_v18 = vpop.permute.xlu1 %717  ;;  %v932_v12 = vld [vmem:[%s4174_s3 + $0x50] sm:$0xff] }
 0x148   :  { %v713_v19 = vpop.permute.xlu0 %712  ;;  %v820_v20 = vadd.f32 %v718_v18, %v436_v14  ;;  %v821_v21 = vadd.f32 %v718_v18, %v437_v15  ;;  %2662 = vmatpush1.bf16.msra.mxu0 %v2661_v13  ;;  %v930_v13 = vld [vmem:[%s4174_s3 + $0x40] sm:$0xff]  ;;  %v931_v14 = vld [vmem:[%s4174_s3 + $0x48] sm:$0xff] }
 0x149   :  { %v818_v22 = vadd.f32 %v713_v19, %v434_v16  ;;  %v819_v23 = vadd.f32 %v713_v19, %v435_v17  ;;  %v935_v15 = vld [vmem:[%s4174_s3 + $0x68] sm:$0xff]  ;;  %v933_v16 = vld [vmem:[%s4174_s3 + $0x58] sm:$0xff]  ;;  %v934_v17 = vld [vmem:[%s4174_s3 + $0x60] sm:$0xff] }
 0x14a   :  { %v916_v24 = vmax.f32 %v820_v20, 0.0  ;;  %v917_v25 = vmax.f32 %v821_v21, 0.0  ;;  %v938_v18 = vld [vmem:[%s4174_s3 + $0x80] sm:$0xff]  ;;  %v936_v19 = vld [vmem:[%s4174_s3 + $0x70] sm:$0xff]  ;;  %v937_v20 = vld [vmem:[%s4174_s3 + $0x78] sm:$0xff] }
 0x14b   :  { %v914_v27 = vmax.f32 %v818_v22, 0.0  ;;  %v915_v28 = vmax.f32 %v819_v23, 0.0  ;;  %v333_v29 = vpop.permute.xlu1 %332  ;;  %v941_v21 = vld [vmem:[%s4174_s3 + $0x98] sm:$0xff]  ;;  %v939_v22 = vld [vmem:[%s4174_s3 + $0x88] sm:$0xff]  ;;  %v940_v23 = vld [vmem:[%s4174_s3 + $0x90] sm:$0xff] }
 0x14c   :  { %v328_v30 = vpop.permute.xlu0 %327  ;;  %v440_v43 = vmul.f32 %v3319_v7, %v333_v29  ;;  %v441_v44 = vmul.f32 %v3323_v8, %v333_v29  ;;  %v945_v29 = vld [vmem:[%s4174_s3 + $0xb8] sm:$0xff] }
 0x14d   :  { %v2691_v31 = vpack.c.bf16 %v917_v25, %v915_v28  ;;  %v2693_v32 = vpack.c.bf16 %v916_v24, %v914_v27  ;;  %v438_v45 = vmul.f32 %v3319_v7, %v328_v30  ;;  %v439_v46 = vmul.f32 %v3323_v8, %v328_v30  ;;  %v922_v7 = vld [vmem:[%s4174_s3] sm:$0xff]  ;;  %v944_v24 = vld [vmem:[%s4174_s3 + $0xb0] sm:$0xff]  ;;  %v943_v27 = vld [vmem:[%s4174_s3 + $0xa8] sm:$0xff] }
 0x14e   :  { %v942_v25 = vld [vmem:[%s4174_s3 + $0xa0] sm:$0xff]  ;;  %v947_v28 = vld [vmem:[%s4174_s3 + $0xc8] sm:$0xff] }
 0x14f   :  { %2692 = vmatprep.subr.bf16.mxu1 %v2691_v31  ;;  %v648_v37 = vpop.permute.xlu1 %647  ;;  %v946_v30 = vld [vmem:[%s4174_s3 + $0xc0] sm:$0xff] }
 0x150   :  { %v643_v38 = vpop.permute.xlu0 %642  ;;  %v792_v39 = vadd.f32 %v648_v37, %v408_v33  ;;  %v793_v40 = vadd.f32 %v648_v37, %v409_v34  ;;  %2694 = vmatpush1.bf16.msra.mxu1 %v2693_v32  ;;  %v950_v31 = vld [vmem:[%s4174_s3 + $0xe0] sm:$0xff]  ;;  %v948_v32 = vld [vmem:[%s4174_s3 + $0xd0] sm:$0xff]  ;;  %v949_v33 = vld [vmem:[%s4174_s3 + $0xd8] sm:$0xff] }
 0x151   :  { %v790_v41 = vadd.f32 %v643_v38, %v406_v35  ;;  %v791_v42 = vadd.f32 %v643_v38, %v407_v36  ;;  %v953_v34 = vld [vmem:[%s4174_s3 + $0xf8] sm:$0xff]  ;;  %v951_v35 = vld [vmem:[%s4174_s3 + $0xe8] sm:$0xff]  ;;  %v952_v36 = vld [vmem:[%s4174_s3 + $0xf0] sm:$0xff] }
 0x152   :  { %v888_v47 = vmax.f32 %v792_v39, 0.0  ;;  %v889_v48 = vmax.f32 %v793_v40, 0.0  ;;  %v956_v37 = vld [vmem:[%s4174_s3 + $0x110] sm:$0xff]  ;;  %v954_v38 = vld [vmem:[%s4174_s3 + $0x100] sm:$0xff]  ;;  %v955_v39 = vld [vmem:[%s4174_s3 + $0x108] sm:$0xff] }
 0x153   :  { %v886_v49 = vmax.f32 %v790_v41, 0.0  ;;  %v887_v50 = vmax.f32 %v791_v42, 0.0  ;;  %v728_v51 = vpop.permute.xlu1 %727  ;;  %v959_v40 = vld [vmem:[%s4174_s3 + $0x128] sm:$0xff]  ;;  %v957_v41 = vld [vmem:[%s4174_s3 + $0x118] sm:$0xff]  ;;  %v958_v42 = vld [vmem:[%s4174_s3 + $0x120] sm:$0xff] }
 0x154   :  { %v723_v52 = vpop.permute.xlu0 %722  ;;  %v824_v53 = vadd.f32 %v728_v51, %v440_v43  ;;  %v825_v54 = vadd.f32 %v728_v51, %v441_v44  ;;  %v962_v43 = vld [vmem:[%s4174_s3 + $0x140] sm:$0xff]  ;;  %v960_v44 = vld [vmem:[%s4174_s3 + $0x130] sm:$0xff]  ;;  %v967_v51 = vld [vmem:[%s4174_s3 + $0x168] sm:$0xff] }
 0x155   :  { %v822_v55 = vadd.f32 %v723_v52, %v438_v45  ;;  %v823_v56 = vadd.f32 %v723_v52, %v439_v46  ;;  %v2663_v57 = vpack.c.bf16 %v889_v48, %v887_v50  ;;  %v2665_v58 = vpack.c.bf16 %v888_v47, %v886_v49  ;;  %v961_v45 = vld [vmem:[%s4174_s3 + $0x138] sm:$0xff]  ;;  %v963_v47 = vld [vmem:[%s4174_s3 + $0x148] sm:$0xff]  ;;  %v964_v48 = vld [vmem:[%s4174_s3 + $0x150] sm:$0xff] }
 0x156   :  { %v920_v59 = vmax.f32 %v824_v53, 0.0  ;;  %v921_v60 = vmax.f32 %v825_v54, 0.0  ;;  %v965_v46 = vld [vmem:[%s4174_s3 + $0x158] sm:$0xff]  ;;  %v968_v49 = vld [vmem:[%s4174_s3 + $0x170] sm:$0xff]  ;;  %v966_v50 = vld [vmem:[%s4174_s3 + $0x160] sm:$0xff] }
 0x157   :  { %v918_v61 = vmax.f32 %v822_v55, 0.0  ;;  %v919_v63 = vmax.f32 %v823_v56, 0.0  ;;  %2664 = vmatprep.subr.bf16.mxu0 %v2663_v57  ;;  %v971_v52 = vld [vmem:[%s4174_s3 + $0x188] sm:$0xff]  ;;  %v969_v53 = vld [vmem:[%s4174_s3 + $0x178] sm:$0xff]  ;;  %v970_v54 = vld [vmem:[%s4174_s3 + $0x180] sm:$0xff] }
 0x158   :  { %2666 = vmatpush1.bf16.msra.mxu0 %v2665_v58  ;;  %v974_v55 = vld [vmem:[%s4174_s3 + $0x1a0] sm:$0xff]  ;;  %v972_v56 = vld [vmem:[%s4174_s3 + $0x190] sm:$0xff]  ;;  %v973_v57 = vld [vmem:[%s4174_s3 + $0x198] sm:$0xff] }
 0x159   :  { %v2695_v8 = vpack.c.bf16 %v921_v60, %v919_v63  ;;  %v2697_v0 = vpack.c.bf16 %v920_v59, %v918_v61  ;;  %v977_v58 = vld [vmem:[%s4174_s3 + $0x1b8] sm:$0xff]  ;;  %v975_v59 = vld [vmem:[%s4174_s3 + $0x1a8] sm:$0xff]  ;;  %v976_v60 = vld [vmem:[%s4174_s3 + $0x1b0] sm:$0xff] }
 0x15a   :  { %v980_v61 = vld [vmem:[%s4174_s3 + $0x1d0] sm:$0xff]  ;;  %v978_v63 = vld [vmem:[%s4174_s3 + $0x1c0] sm:$0xff] }
 0x15b   :  { %2696 = vmatprep.subr.bf16.mxu1 %v2695_v8  ;;  %1419 = vmatmul.mubr.f32.vlgmr.msra.gmra.mrb[0].mxu0 %v922_v7  ;;  %v979_v7 = vld [vmem:[%s4174_s3 + $0x1c8] sm:$0xff] }
 0x15c   :  { %2698 = vmatpush1.bf16.msra.mxu1 %v2697_v0  ;;  %1424 = vmatprep.mubr.f32.mxu0 %v926_v2  ;;  %v983_v8 = vld [vmem:[%s4174_s3 + $0x1e8] sm:$0xff]  ;;  %v981_v0 = vld [vmem:[%s4174_s3 + $0x1d8] sm:$0xff]  ;;  %v982_v2 = vld [vmem:[%s4174_s3 + $0x1e0] sm:$0xff] }
 0x15f   :  { %1772 = vmatmul.mubr.f32.vlgmr.msra.gmra.mrb[0].mxu1 %v924_v3  ;;  %1425 = vmatmul.mubr.f32.gmra.mrb[2].mxu0 %v925_v6  ;;  %v986_v3 = vld [vmem:[%s4174_s3 + $0x200] sm:$0xff]  ;;  %v984_v6 = vld [vmem:[%s4174_s3 + $0x1f0] sm:$0xff] }
 0x160   :  { %1777 = vmatprep.mubr.f32.mxu1 %v3053_v26  ;;  %1430 = vmatprep.mubr.f32.mxu0 %v929_v9  ;;  %v985_v9 = vld [vmem:[%s4174_s3 + $0x1f8] sm:$0xff] }
 0x163   :  { %1778 = vmatmul.mubr.f32.gmra.mrb[2].mxu1 %v927_v10  ;;  %1431 = vmatmul.mubr.f32.gmra.mrb[4].mxu0 %v928_v11  ;;  %v989_v10 = vld [vmem:[%s4174_s3 + $0x218] sm:$0xff]  ;;  %v987_v11 = vld [vmem:[%s4174_s3 + $0x208] sm:$0xff] }
 0x164   :  { %1783 = vmatprep.mubr.f32.mxu1 %v3053_v26  ;;  %1436 = vmatprep.mubr.f32.mxu0 %v932_v12  ;;  %v988_v12 = vld [vmem:[%s4174_s3 + $0x210] sm:$0xff] }
 0x167   :  { %1784 = vmatmul.mubr.f32.gmra.mrb[4].mxu1 %v930_v13  ;;  %1437 = vmatmul.mubr.f32.gmra.mrb[6].mxu0 %v931_v14  ;;  %v992_v13 = vld [vmem:[%s4174_s3 + $0x230] sm:$0xff]  ;;  %v990_v14 = vld [vmem:[%s4174_s3 + $0x220] sm:$0xff] }
 0x168   :  { %1789 = vmatprep.mubr.f32.mxu1 %v3053_v26  ;;  %1442 = vmatprep.mubr.f32.mxu0 %v935_v15  ;;  %v991_v15 = vld [vmem:[%s4174_s3 + $0x228] sm:$0xff] }
 0x16b   :  { %1790 = vmatmul.mubr.f32.gmra.mrb[6].mxu1 %v933_v16  ;;  %1443 = vmatmul.mubr.f32.gmra.mrb[8].mxu0 %v934_v17  ;;  %v995_v16 = vld [vmem:[%s4174_s3 + $0x248] sm:$0xff]  ;;  %v993_v17 = vld [vmem:[%s4174_s3 + $0x238] sm:$0xff] }
 0x16c   :  { %1795 = vmatprep.mubr.f32.mxu1 %v3053_v26  ;;  %1448 = vmatprep.mubr.f32.mxu0 %v938_v18  ;;  %v994_v18 = vld [vmem:[%s4174_s3 + $0x240] sm:$0xff] }
 0x16f   :  { %1796 = vmatmul.mubr.f32.gmra.mrb[8].mxu1 %v936_v19  ;;  %1449 = vmatmul.mubr.f32.gmra.mrb[10].mxu0 %v937_v20  ;;  %v998_v19 = vld [vmem:[%s4174_s3 + $0x260] sm:$0xff]  ;;  %v996_v20 = vld [vmem:[%s4174_s3 + $0x250] sm:$0xff] }
 0x170   :  { %1801 = vmatprep.mubr.f32.mxu1 %v3053_v26  ;;  %1454 = vmatprep.mubr.f32.mxu0 %v941_v21  ;;  %v997_v21 = vld [vmem:[%s4174_s3 + $0x258] sm:$0xff] }
 0x173   :  { %1802 = vmatmul.mubr.f32.gmra.mrb[10].mxu1 %v939_v22  ;;  %1455 = vmatmul.mubr.f32.gmra.mrb[12].mxu0 %v940_v23  ;;  %v1001_v22 = vld [vmem:[%s4174_s3 + $0x278] sm:$0xff]  ;;  %v999_v23 = vld [vmem:[%s4174_s3 + $0x268] sm:$0xff] }
 0x174   :  { %1807 = vmatprep.mubr.f32.mxu1 %v3053_v26  ;;  %1460 = vmatprep.mubr.f32.mxu0 %v944_v24  ;;  %v1000_v24 = vld [vmem:[%s4174_s3 + $0x270] sm:$0xff] }
 0x177   :  { %1808 = vmatmul.mubr.f32.gmra.mrb[12].mxu1 %v942_v25  ;;  %1461 = vmatmul.mubr.f32.gmra.mrb[14].mxu0 %v943_v27  ;;  %v1004_v25 = vld [vmem:[%s4174_s3 + $0x290] sm:$0xff]  ;;  %v1002_v27 = vld [vmem:[%s4174_s3 + $0x280] sm:$0xff] }
 0x178   :  { %1813 = vmatprep.mubr.f32.mxu1 %v3053_v26  ;;  %1466 = vmatprep.mubr.f32.mxu0 %v947_v28  ;;  %v1003_v28 = vld [vmem:[%s4174_s3 + $0x288] sm:$0xff] }
 0x17b   :  { %1814 = vmatmul.mubr.f32.gmra.mrb[14].mxu1 %v945_v29  ;;  %1467 = vmatmul.mubr.f32.gmra.mrb[16].mxu0 %v946_v30  ;;  %v1007_v29 = vld [vmem:[%s4174_s3 + $0x2a8] sm:$0xff]  ;;  %v1005_v30 = vld [vmem:[%s4174_s3 + $0x298] sm:$0xff] }
 0x17c   :  { %1819 = vmatprep.mubr.f32.mxu1 %v3053_v26  ;;  %1472 = vmatprep.mubr.f32.mxu0 %v950_v31  ;;  %v1006_v31 = vld [vmem:[%s4174_s3 + $0x2a0] sm:$0xff] }
 0x17f   :  { %1820 = vmatmul.mubr.f32.gmra.mrb[16].mxu1 %v948_v32  ;;  %1473 = vmatmul.mubr.f32.gmra.mrb[18].mxu0 %v949_v33  ;;  %v1010_v32 = vld [vmem:[%s4174_s3 + $0x2c0] sm:$0xff]  ;;  %v1008_v33 = vld [vmem:[%s4174_s3 + $0x2b0] sm:$0xff] }
 0x180   :  { %1825 = vmatprep.mubr.f32.mxu1 %v3053_v26  ;;  %1478 = vmatprep.mubr.f32.mxu0 %v953_v34  ;;  %v1009_v34 = vld [vmem:[%s4174_s3 + $0x2b8] sm:$0xff] }
 0x183   :  { %1826 = vmatmul.mubr.f32.gmra.mrb[18].mxu1 %v951_v35  ;;  %1479 = vmatmul.mubr.f32.gmra.mrb[20].mxu0 %v952_v36  ;;  %v1013_v35 = vld [vmem:[%s4174_s3 + $0x2d8] sm:$0xff]  ;;  %v1011_v36 = vld [vmem:[%s4174_s3 + $0x2c8] sm:$0xff] }
 0x184   :  { %1831 = vmatprep.mubr.f32.mxu1 %v3053_v26  ;;  %1484 = vmatprep.mubr.f32.mxu0 %v956_v37  ;;  %v1012_v37 = vld [vmem:[%s4174_s3 + $0x2d0] sm:$0xff] }
 0x187   :  { %1832 = vmatmul.mubr.f32.gmra.mrb[20].mxu1 %v954_v38  ;;  %1485 = vmatmul.mubr.f32.gmra.mrb[22].mxu0 %v955_v39  ;;  %v1016_v38 = vld [vmem:[%s4174_s3 + $0x2f0] sm:$0xff]  ;;  %v1014_v39 = vld [vmem:[%s4174_s3 + $0x2e0] sm:$0xff] }
 0x188   :  { %1837 = vmatprep.mubr.f32.mxu1 %v3053_v26  ;;  %1490 = vmatprep.mubr.f32.mxu0 %v959_v40  ;;  %v1015_v40 = vld [vmem:[%s4174_s3 + $0x2e8] sm:$0xff] }
 0x18b   :  { %1838 = vmatmul.mubr.f32.gmra.mrb[22].mxu1 %v957_v41  ;;  %1491 = vmatmul.mubr.f32.gmra.mrb[24].mxu0 %v958_v42  ;;  %v1019_v41 = vld [vmem:[%s4174_s3 + $0x308] sm:$0xff]  ;;  %v1017_v42 = vld [vmem:[%s4174_s3 + $0x2f8] sm:$0xff] }
 0x18c   :  { %1843 = vmatprep.mubr.f32.mxu1 %v3053_v26  ;;  %1496 = vmatprep.mubr.f32.mxu0 %v962_v43  ;;  %v1018_v43 = vld [vmem:[%s4174_s3 + $0x300] sm:$0xff] }
 0x18f   :  { %1844 = vmatmul.mubr.f32.gmra.mrb[24].mxu1 %v960_v44  ;;  %1497 = vmatmul.mubr.f32.gmra.mrb[26].mxu0 %v961_v45  ;;  %v1022_v44 = vld [vmem:[%s4174_s3 + $0x320] sm:$0xff]  ;;  %v1020_v45 = vld [vmem:[%s4174_s3 + $0x310] sm:$0xff] }
 0x190   :  { %1849 = vmatprep.mubr.f32.mxu1 %v3053_v26  ;;  %1502 = vmatprep.mubr.f32.mxu0 %v965_v46  ;;  %v1021_v46 = vld [vmem:[%s4174_s3 + $0x318] sm:$0xff] }
 0x193   :  { %1850 = vmatmul.mubr.f32.gmra.mrb[26].mxu1 %v963_v47  ;;  %1503 = vmatmul.mubr.f32.gmra.mrb[28].mxu0 %v964_v48  ;;  %v1025_v47 = vld [vmem:[%s4174_s3 + $0x338] sm:$0xff]  ;;  %v1023_v48 = vld [vmem:[%s4174_s3 + $0x328] sm:$0xff] }
 0x194   :  { %1855 = vmatprep.mubr.f32.mxu1 %v3053_v26  ;;  %1508 = vmatprep.mubr.f32.mxu0 %v968_v49  ;;  %v1024_v49 = vld [vmem:[%s4174_s3 + $0x330] sm:$0xff] }
 0x197   :  { %1856 = vmatmul.mubr.f32.gmra.mrb[28].mxu1 %v966_v50  ;;  %1509 = vmatmul.mubr.f32.gmra.mrb[30].mxu0 %v967_v51  ;;  %v1028_v50 = vld [vmem:[%s4174_s3 + $0x350] sm:$0xff]  ;;  %v1026_v51 = vld [vmem:[%s4174_s3 + $0x340] sm:$0xff] }
 0x198   :  { %1861 = vmatprep.mubr.f32.mxu1 %v3053_v26  ;;  %1514 = vmatprep.mubr.f32.mxu0 %v971_v52  ;;  %v1027_v52 = vld [vmem:[%s4174_s3 + $0x348] sm:$0xff] }
 0x19b   :  { %1862 = vmatmul.mubr.f32.gmra.mrb[30].mxu1 %v969_v53  ;;  %1515 = vmatmul.mubr.f32.gmra.mrb[32].mxu0 %v970_v54  ;;  %v1031_v53 = vld [vmem:[%s4174_s3 + $0x368] sm:$0xff]  ;;  %v1029_v54 = vld [vmem:[%s4174_s3 + $0x358] sm:$0xff] }
 0x19c   :  { %1867 = vmatprep.mubr.f32.mxu1 %v3053_v26  ;;  %1520 = vmatprep.mubr.f32.mxu0 %v974_v55  ;;  %v1030_v55 = vld [vmem:[%s4174_s3 + $0x360] sm:$0xff] }
 0x19f   :  { %1868 = vmatmul.mubr.f32.gmra.mrb[32].mxu1 %v972_v56  ;;  %1521 = vmatmul.mubr.f32.gmra.mrb[34].mxu0 %v973_v57  ;;  %v1034_v56 = vld [vmem:[%s4174_s3 + $0x380] sm:$0xff]  ;;  %v1032_v57 = vld [vmem:[%s4174_s3 + $0x370] sm:$0xff] }
 0x1a0   :  { %1873 = vmatprep.mubr.f32.mxu1 %v3053_v26  ;;  %1526 = vmatprep.mubr.f32.mxu0 %v977_v58  ;;  %v1033_v58 = vld [vmem:[%s4174_s3 + $0x378] sm:$0xff] }
 0x1a3   :  { %1874 = vmatmul.mubr.f32.gmra.mrb[34].mxu1 %v975_v59  ;;  %1527 = vmatmul.mubr.f32.gmra.mrb[36].mxu0 %v976_v60  ;;  %v1037_v59 = vld [vmem:[%s4174_s3 + $0x398] sm:$0xff]  ;;  %v1035_v60 = vld [vmem:[%s4174_s3 + $0x388] sm:$0xff] }
 0x1a4   :  { %1879 = vmatprep.mubr.f32.mxu1 %v3053_v26  ;;  %1532 = vmatprep.mubr.f32.mxu0 %v980_v61  ;;  %v1036_v61 = vld [vmem:[%s4174_s3 + $0x390] sm:$0xff] }
 0x1a7   :  { %1880 = vmatmul.mubr.f32.gmra.mrb[36].mxu1 %v978_v63  ;;  %1533 = vmatmul.mubr.f32.gmra.mrb[38].mxu0 %v979_v7  ;;  %v1040_v63 = vld [vmem:[%s4174_s3 + $0x3b0] sm:$0xff]  ;;  %v1038_v7 = vld [vmem:[%s4174_s3 + $0x3a0] sm:$0xff] }
 0x1a8   :  { %1885 = vmatprep.mubr.f32.mxu1 %v3053_v26  ;;  %1538 = vmatprep.mubr.f32.mxu0 %v983_v8  ;;  %v1039_v8 = vld [vmem:[%s4174_s3 + $0x3a8] sm:$0xff] }
 0x1ab   :  { %1886 = vmatmul.mubr.f32.gmra.mrb[38].mxu1 %v981_v0  ;;  %1539 = vmatmul.mubr.f32.gmra.mrb[40].mxu0 %v982_v2  ;;  %v1043_v0 = vld [vmem:[%s4174_s3 + $0x3c8] sm:$0xff]  ;;  %v1041_v2 = vld [vmem:[%s4174_s3 + $0x3b8] sm:$0xff] }
 0x1ac   :  { %1891 = vmatprep.mubr.f32.mxu1 %v3053_v26  ;;  %1544 = vmatprep.mubr.f32.mxu0 %v986_v3  ;;  %v1042_v3 = vld [vmem:[%s4174_s3 + $0x3c0] sm:$0xff] }
 0x1af   :  { %1892 = vmatmul.mubr.f32.gmra.mrb[40].mxu1 %v984_v6  ;;  %1545 = vmatmul.mubr.f32.gmra.mrb[42].mxu0 %v985_v9  ;;  %v1046_v6 = vld [vmem:[%s4174_s3 + $0x3e0] sm:$0xff]  ;;  %v1044_v9 = vld [vmem:[%s4174_s3 + $0x3d0] sm:$0xff] }
 0x1b0   :  { %1897 = vmatprep.mubr.f32.mxu1 %v3053_v26  ;;  %1550 = vmatprep.mubr.f32.mxu0 %v989_v10  ;;  %v1045_v10 = vld [vmem:[%s4174_s3 + $0x3d8] sm:$0xff] }
 0x1b3   :  { %1898 = vmatmul.mubr.f32.gmra.mrb[42].mxu1 %v987_v11  ;;  %1551 = vmatmul.mubr.f32.gmra.mrb[44].mxu0 %v988_v12  ;;  %v1049_v11 = vld [vmem:[%s4174_s3 + $0x3f8] sm:$0xff]  ;;  %v1047_v12 = vld [vmem:[%s4174_s3 + $0x3e8] sm:$0xff] }
 0x1b4   :  { %1903 = vmatprep.mubr.f32.mxu1 %v3053_v26  ;;  %1556 = vmatprep.mubr.f32.mxu0 %v992_v13  ;;  %v1048_v13 = vld [vmem:[%s4174_s3 + $0x3f0] sm:$0xff] }
 0x1b7   :  { %1904 = vmatmul.mubr.f32.gmra.mrb[44].mxu1 %v990_v14  ;;  %1557 = vmatmul.mubr.f32.gmra.mrb[46].mxu0 %v991_v15  ;;  %v1052_v14 = vld [vmem:[%s4174_s3 + $0x410] sm:$0xff]  ;;  %v1050_v15 = vld [vmem:[%s4174_s3 + $0x400] sm:$0xff] }
 0x1b8   :  { %1909 = vmatprep.mubr.f32.mxu1 %v3053_v26  ;;  %1562 = vmatprep.mubr.f32.mxu0 %v995_v16  ;;  %v1051_v16 = vld [vmem:[%s4174_s3 + $0x408] sm:$0xff] }
 0x1bb   :  { %1910 = vmatmul.mubr.f32.gmra.mrb[46].mxu1 %v993_v17  ;;  %1563 = vmatmul.mubr.f32.gmra.mrb[48].mxu0 %v994_v18  ;;  %v1055_v17 = vld [vmem:[%s4174_s3 + $0x428] sm:$0xff]  ;;  %v1053_v18 = vld [vmem:[%s4174_s3 + $0x418] sm:$0xff] }
 0x1bc   :  { %1915 = vmatprep.mubr.f32.mxu1 %v3053_v26  ;;  %1568 = vmatprep.mubr.f32.mxu0 %v998_v19  ;;  %v1054_v19 = vld [vmem:[%s4174_s3 + $0x420] sm:$0xff] }
 0x1bf   :  { %1916 = vmatmul.mubr.f32.gmra.mrb[48].mxu1 %v996_v20  ;;  %1569 = vmatmul.mubr.f32.gmra.mrb[50].mxu0 %v997_v21  ;;  %v1058_v20 = vld [vmem:[%s4174_s3 + $0x440] sm:$0xff]  ;;  %v1056_v21 = vld [vmem:[%s4174_s3 + $0x430] sm:$0xff] }
 0x1c0   :  { %1921 = vmatprep.mubr.f32.mxu1 %v3053_v26  ;;  %1574 = vmatprep.mubr.f32.mxu0 %v1001_v22  ;;  %v1057_v22 = vld [vmem:[%s4174_s3 + $0x438] sm:$0xff] }
 0x1c3   :  { %1922 = vmatmul.mubr.f32.gmra.mrb[50].mxu1 %v999_v23  ;;  %1575 = vmatmul.mubr.f32.gmra.mrb[52].mxu0 %v1000_v24  ;;  %v1061_v23 = vld [vmem:[%s4174_s3 + $0x458] sm:$0xff]  ;;  %v1059_v24 = vld [vmem:[%s4174_s3 + $0x448] sm:$0xff] }
 0x1c4   :  { %1927 = vmatprep.mubr.f32.mxu1 %v3053_v26  ;;  %1580 = vmatprep.mubr.f32.mxu0 %v1004_v25  ;;  %v1060_v25 = vld [vmem:[%s4174_s3 + $0x450] sm:$0xff] }
 0x1c7   :  { %1928 = vmatmul.mubr.f32.gmra.mrb[52].mxu1 %v1002_v27  ;;  %1581 = vmatmul.mubr.f32.gmra.mrb[54].mxu0 %v1003_v28  ;;  %v1064_v27 = vld [vmem:[%s4174_s3 + $0x470] sm:$0xff]  ;;  %v1062_v28 = vld [vmem:[%s4174_s3 + $0x460] sm:$0xff] }
 0x1c8   :  { %1933 = vmatprep.mubr.f32.mxu1 %v3053_v26  ;;  %1586 = vmatprep.mubr.f32.mxu0 %v1007_v29  ;;  %v1063_v29 = vld [vmem:[%s4174_s3 + $0x468] sm:$0xff] }
 0x1cb   :  { %1934 = vmatmul.mubr.f32.gmra.mrb[54].mxu1 %v1005_v30  ;;  %1587 = vmatmul.mubr.f32.gmra.mrb[56].mxu0 %v1006_v31  ;;  %v1065_v30 = vld [vmem:[%s4174_s3 + $0x478] sm:$0xff] }
 0x1cc   :  { %1939 = vmatprep.mubr.f32.mxu1 %v3053_v26  ;;  %1592 = vmatprep.mubr.f32.mxu0 %v1010_v32  ;;  %v1117_v32 = vpop.permute.xlu0 %1116 }
 0x1cf   :  { %1940 = vmatmul.mubr.f32.gmra.mrb[56].mxu1 %v1008_v33  ;;  %1593 = vmatmul.mubr.f32.gmra.mrb[58].mxu0 %v1009_v34 }
 0x1d0   :  { %1945 = vmatprep.mubr.f32.mxu1 %v3053_v26  ;;  %1598 = vmatprep.mubr.f32.mxu0 %v1013_v35 }
 0x1d3   :  { %1946 = vmatmul.mubr.f32.gmra.mrb[58].mxu1 %v1011_v36  ;;  %1599 = vmatmul.mubr.f32.gmra.mrb[60].mxu0 %v1012_v37 }
 0x1d4   :  { %1951 = vmatprep.mubr.f32.mxu1 %v3053_v26  ;;  %1604 = vmatprep.mubr.f32.mxu0 %v1016_v38 }
 0x1d7   :  { %1952 = vmatmul.mubr.f32.gmra.mrb[60].mxu1 %v1014_v39  ;;  %1605 = vmatmul.mubr.f32.gmra.mrb[62].mxu0 %v1015_v40  ;;  %v1122_v40 = vpop.permute.xlu1 %1121 }
 0x1d8   :  { %1957 = vmatprep.mubr.f32.mxu1 %v3053_v26  ;;  %1610 = vmatprep.mubr.f32.mxu0 %v1019_v41  ;;  %v2156_v41 = vld [vmem:[#allocation3] sm:$0xff] }
 0x1db   :  { %1958 = vmatmul.mubr.f32.gmra.mrb[62].mxu1 %v1017_v42  ;;  %1611 = vmatmul.mubr.f32.gmra.mrb[64].mxu0 %v1018_v43 }
 0x1dc   :  { %1963 = vmatprep.mubr.f32.mxu1 %v3053_v26  ;;  %1616 = vmatprep.mubr.f32.mxu0 %v1022_v44  ;;  %v2157_v44 = vld [vmem:[#allocation3 + $0x8] sm:$0xff] }
 0x1df   :  { %1964 = vmatmul.mubr.f32.gmra.mrb[64].mxu1 %v1020_v45  ;;  %1617 = vmatmul.mubr.f32.gmra.mrb[66].mxu0 %v1021_v46 }
 0x1e0   :  { %1969 = vmatprep.mubr.f32.mxu1 %v3053_v26  ;;  %1622 = vmatprep.mubr.f32.mxu0 %v1025_v47 }
 0x1e3   :  { %1970 = vmatmul.mubr.f32.gmra.mrb[66].mxu1 %v1023_v48  ;;  %1623 = vmatmul.mubr.f32.gmra.mrb[68].mxu0 %v1024_v49  ;;  %v2204_v49 = vunpack.c.l.bf16 %v2156_v41 }
 0x1e4   :  { %1975 = vmatprep.mubr.f32.mxu1 %v3053_v26  ;;  %1628 = vmatprep.mubr.f32.mxu0 %v1028_v50 }
 0x1e7   :  { %1976 = vmatmul.mubr.f32.gmra.mrb[68].mxu1 %v1026_v51  ;;  %1629 = vmatmul.mubr.f32.gmra.mrb[70].mxu0 %v1027_v52  ;;  %v2206_v52 = vunpack.c.l.bf16 %v2157_v44 }
 0x1e8   :  { %1981 = vmatprep.mubr.f32.mxu1 %v3053_v26  ;;  %1634 = vmatprep.mubr.f32.mxu0 %v1031_v53 }
 0x1eb   :  { %1982 = vmatmul.mubr.f32.gmra.mrb[70].mxu1 %v1029_v54  ;;  %1635 = vmatmul.mubr.f32.gmra.mrb[72].mxu0 %v1030_v55  ;;  %v1127_v54 = vpop.permute.xlu0 %1126 }
 0x1ec   :  { %1987 = vmatprep.mubr.f32.mxu1 %v3053_v26  ;;  %1640 = vmatprep.mubr.f32.mxu0 %v1034_v56  ;;  %v2205_v56 = vunpack.c.h.bf16 %v2156_v41 }
 0x1ef   :  { %1988 = vmatmul.mubr.f32.gmra.mrb[72].mxu1 %v1032_v57  ;;  %1641 = vmatmul.mubr.f32.gmra.mrb[74].mxu0 %v1033_v58 }
 0x1f0   :  { %1993 = vmatprep.mubr.f32.mxu1 %v3053_v26  ;;  %1646 = vmatprep.mubr.f32.mxu0 %v1037_v59  ;;  %v2207_v59 = vunpack.c.h.bf16 %v2157_v44 }
 0x1f3   :  { %1994 = vmatmul.mubr.f32.gmra.mrb[74].mxu1 %v1035_v60  ;;  %1647 = vmatmul.mubr.f32.gmra.mrb[76].mxu0 %v1036_v61 }
 0x1f4   :  { %1999 = vmatprep.mubr.f32.mxu1 %v3053_v26  ;;  %1652 = vmatprep.mubr.f32.mxu0 %v1040_v63 }
 0x1f7   :  { %2000 = vmatmul.mubr.f32.gmra.mrb[76].mxu1 %v1038_v7  ;;  %1653 = vmatmul.mubr.f32.gmra.mrb[78].mxu0 %v1039_v8 }
 0x1f8   :  { %2005 = vmatprep.mubr.f32.mxu1 %v3053_v26  ;;  %1658 = vmatprep.mubr.f32.mxu0 %v1043_v0 }
 0x1fb   :  { %2006 = vmatmul.mubr.f32.gmra.mrb[78].mxu1 %v1041_v2  ;;  %1659 = vmatmul.mubr.f32.gmra.mrb[80].mxu0 %v1042_v3 }
 0x1fc   :  { %2011 = vmatprep.mubr.f32.mxu1 %v3053_v26  ;;  %1664 = vmatprep.mubr.f32.mxu0 %v1046_v6 }
 0x1ff   :  { %2012 = vmatmul.mubr.f32.gmra.mrb[80].mxu1 %v1044_v9  ;;  %1665 = vmatmul.mubr.f32.gmra.mrb[82].mxu0 %v1045_v10  ;;  %v2158_v9 = vld [vmem:[#allocation3 + $0x10] sm:$0xff] }
 0x200   :  { %2017 = vmatprep.mubr.f32.mxu1 %v3053_v26  ;;  %1670 = vmatprep.mubr.f32.mxu0 %v1049_v11  ;;  %v1132_v11 = vpop.permute.xlu1 %1131 }
 0x203   :  { %2018 = vmatmul.mubr.f32.gmra.mrb[82].mxu1 %v1047_v12  ;;  %1671 = vmatmul.mubr.f32.gmra.mrb[84].mxu0 %v1048_v13 }
 0x204   :  { %2023 = vmatprep.mubr.f32.mxu1 %v3053_v26  ;;  %1676 = vmatprep.mubr.f32.mxu0 %v1052_v14 }
 0x207   :  { %2024 = vmatmul.mubr.f32.gmra.mrb[84].mxu1 %v1050_v15  ;;  %1677 = vmatmul.mubr.f32.gmra.mrb[86].mxu0 %v1051_v16  ;;  %v2159_v16 = vld [vmem:[#allocation3 + $0x18] sm:$0xff] }
 0x208   :  { %2029 = vmatprep.mubr.f32.mxu1 %v3053_v26  ;;  %1682 = vmatprep.mubr.f32.mxu0 %v1055_v17 }
 0x20b   :  { %2030 = vmatmul.mubr.f32.gmra.mrb[86].mxu1 %v1053_v18  ;;  %1683 = vmatmul.mubr.f32.gmra.mrb[88].mxu0 %v1054_v19  ;;  %v2208_v19 = vunpack.c.l.bf16 %v2158_v9 }
 0x20c   :  { %2035 = vmatprep.mubr.f32.mxu1 %v3053_v26  ;;  %1688 = vmatprep.mubr.f32.mxu0 %v1058_v20 }
 0x20f   :  { %2036 = vmatmul.mubr.f32.gmra.mrb[88].mxu1 %v1056_v21  ;;  %1689 = vmatmul.mubr.f32.gmra.mrb[90].mxu0 %v1057_v22 }
 0x210   :  { %2041 = vmatprep.mubr.f32.mxu1 %v3053_v26  ;;  %1694 = vmatprep.mubr.f32.mxu0 %v1061_v23  ;;  %v2396_v23 = vld [vmem:[%s4176_s5] sm:$0x7] }
 0x213   :  { %2042 = vmatmul.mubr.f32.gmra.mrb[90].mxu1 %v1059_v24  ;;  %1695 = vmatmul.mubr.f32.gmra.mrb[92].mxu0 %v1060_v25 }
 0x214   :  { %2047 = vmatprep.mubr.f32.mxu1 %v3053_v26  ;;  %1700 = vmatprep.mubr.f32.mxu0 %v1064_v27 }
 0x217   :  { %2048 = vmatmul.mubr.f32.gmra.mrb[92].mxu1 %v1062_v28  ;;  %1701 = vmatmul.mubr.f32.gmra.mrb[94].mxu0 %v1063_v29  ;;  %v2210_v28 = vunpack.c.l.bf16 %v2159_v16 }
 0x218   :  { %2053 = vmatprep.mubr.f32.mxu1 %v3053_v26 }
 0x21b   :  { %2054 = vmatmul.mubr.f32.gmra.mrb[94].mxu1 %v1065_v30  ;;  %v2415_v30 = vrot.slane %v2396_v23, %v342_v5  ;;  %v1142_v5 = vpop.permute.xlu1 %1141  ;;  %v2162_v23 = vld [vmem:[#allocation3 + $0x30] sm:$0xff] }
 0x21d   :  { %2487 = vmatprep.mubr.f32.mxu1 %v2415_v30 }
 0x22e   :  { %v1420_v31 = vpop.f32.mrb[0].mxu0 }
 0x22f   :  { %v1422_v33 = vpop.f32.mrb[1].mxu0  ;;  %v1421_v34 = vadd.f32 %v1420_v31, %v1117_v32  ;;  %v1137_v31 = vpop.permute.xlu0 %1136 }
 0x230   :  { %v1423_v35 = vadd.f32 %v1422_v33, %v1117_v32  ;;  %v2209_v33 = vunpack.c.h.bf16 %v2158_v9 }
 0x232   :  { %v1773_v36 = vpop.f32.mrb[0].mxu1  ;;  %v1426_v37 = vpop.f32.mrb[2].mxu0 }
 0x233   :  { %v1774_v38 = vadd.f32 %v1773_v36, %v1421_v34  ;;  %v1775_v39 = vpop.f32.mrb[1].mxu1  ;;  %v1428_v42 = vpop.f32.mrb[3].mxu0  ;;  %v1427_v45 = vadd.f32 %v1426_v37, %v1122_v40  ;;  %v2211_v36 = vunpack.c.h.bf16 %v2159_v16 }
 0x234   :  { %v1776_v43 = vadd.f32 %v1775_v39, %v1423_v35  ;;  %v1429_v46 = vadd.f32 %v1428_v42, %v1122_v40 }
 0x235   :  { %v2060_v48 = vmax.f32 %v1774_v38, 0.0 }
 0x236   :  { %v1779_v47 = vpop.f32.mrb[2].mxu1  ;;  %v1432_v50 = vpop.f32.mrb[4].mxu0  ;;  %v2061_v55 = vmax.f32 %v1776_v43, 0.0 }
 0x237   :  { %v1780_v51 = vadd.f32 %v1779_v47, %v1427_v45  ;;  %v1781_v53 = vpop.f32.mrb[3].mxu1  ;;  %v1434_v57 = vpop.f32.mrb[5].mxu0  ;;  %v1433_v60 = vadd.f32 %v1432_v50, %v1127_v54  ;;  %v2300_v0 = vmul.f32 %v2204_v49, %v2060_v48  ;;  %v2160_v49 = vld [vmem:[#allocation3 + $0x20] sm:$0xff] }
 0x238   :  { %v1782_v58 = vadd.f32 %v1781_v53, %v1429_v46  ;;  %v1435_v63 = vadd.f32 %v1434_v57, %v1127_v54  ;;  %v2301_v12 = vmul.f32 %v2205_v56, %v2061_v55 }
 0x239   :  { %v2062_v61 = vmax.f32 %v1780_v51, 0.0 }
 0x23a   :  { %v2063_v7 = vmax.f32 %v1782_v58, 0.0  ;;  %v1785_v8 = vpop.f32.mrb[4].mxu1  ;;  %v1438_v3 = vpop.f32.mrb[6].mxu0 }
 0x23b   :  { %v2302_v2 = vmul.f32 %v2206_v52, %v2062_v61  ;;  %v1786_v6 = vadd.f32 %v1785_v8, %v1433_v60  ;;  %v1787_v10 = vpop.f32.mrb[5].mxu1  ;;  %v1440_v14 = vpop.f32.mrb[7].mxu0  ;;  %v1439_v18 = vadd.f32 %v1438_v3, %v1132_v11  ;;  %v2161_v52 = vld [vmem:[#allocation3 + $0x28] sm:$0xff] }
 0x23c   :  { %v2303_v13 = vmul.f32 %v2207_v59, %v2063_v7  ;;  %v1788_v15 = vadd.f32 %v1787_v10, %v1435_v63  ;;  %v1441_v20 = vadd.f32 %v1440_v14, %v1132_v11  ;;  %v2212_v59 = vunpack.c.l.bf16 %v2160_v49  ;;  %v1147_v8 = vpop.permute.xlu0 %1146 }
 0x23d   :  { %v2701_v17 = vpack.c.bf16 %v2302_v2, %v2300_v0  ;;  %v2064_v24 = vmax.f32 %v1786_v6, 0.0  ;;  %v2214_v63 = vunpack.c.l.bf16 %v2161_v52  ;;  %v2213_v2 = vunpack.c.h.bf16 %v2160_v49 }
 0x23e   :  { %v1791_v21 = vpop.f32.mrb[6].mxu1  ;;  %v2699_v22 = vpack.c.bf16 %v2303_v13, %v2301_v12  ;;  %v1444_v25 = vpop.f32.mrb[8].mxu0  ;;  %v2065_v32 = vmax.f32 %v1788_v15, 0.0  ;;  %v2215_v9 = vunpack.c.h.bf16 %v2161_v52 }
 0x23f   :  { %v1792_v27 = vadd.f32 %v1791_v21, %v1439_v18  ;;  %v1793_v29 = vpop.f32.mrb[7].mxu1  ;;  %v1446_v34 = vpop.f32.mrb[9].mxu0  ;;  %v1445_v37 = vadd.f32 %v1444_v25, %v1137_v31  ;;  %v2304_v42 = vmul.f32 %v2208_v19, %v2064_v24 }
 0x240   :  { %v1794_v35 = vadd.f32 %v1793_v29, %v1441_v20  ;;  %2700 = vmatprep.subr.bf16.mxu1 %v2699_v22  ;;  %v1447_v39 = vadd.f32 %v1446_v34, %v1137_v31  ;;  %v2305_v47 = vmul.f32 %v2209_v33, %v2065_v32  ;;  %v1152_v20 = vpop.permute.xlu1 %1151  ;;  %v2216_v34 = vunpack.c.l.bf16 %v2162_v23 }
 0x241   :  { %v2066_v38 = vmax.f32 %v1792_v27, 0.0  ;;  %2702 = vmatpush1.bf16.msra.mxu1 %v2701_v17  ;;  %v2163_v27 = vld [vmem:[#allocation3 + $0x38] sm:$0xff] }
 0x242   :  { %v2067_v40 = vmax.f32 %v1794_v35, 0.0  ;;  %v1797_v41 = vpop.f32.mrb[8].mxu1  ;;  %v1450_v44 = vpop.f32.mrb[10].mxu0 }
 0x243   :  { %v2306_v43 = vmul.f32 %v2210_v28, %v2066_v38  ;;  %v1798_v45 = vadd.f32 %v1797_v41, %v1445_v37  ;;  %v1799_v46 = vpop.f32.mrb[9].mxu1  ;;  %v1452_v50 = vpop.f32.mrb[11].mxu0  ;;  %v1451_v54 = vadd.f32 %v1450_v44, %v1142_v5  ;;  %v2218_v37 = vunpack.c.l.bf16 %v2163_v27 }
 0x244   :  { %v2307_v48 = vmul.f32 %v2211_v36, %v2067_v40  ;;  %v1800_v51 = vadd.f32 %v1799_v46, %v1447_v39  ;;  %v1453_v55 = vadd.f32 %v1452_v50, %v1142_v5  ;;  %v1157_v39 = vpop.permute.xlu0 %1156  ;;  %v2217_v41 = vunpack.c.h.bf16 %v2162_v23 }
 0x245   :  { %v2705_v53 = vpack.c.bf16 %v2306_v43, %v2304_v42  ;;  %v2068_v58 = vmax.f32 %v1798_v45, 0.0  ;;  %v2219_v44 = vunpack.c.h.bf16 %v2163_v27 }
 0x246   :  { %v1803_v56 = vpop.f32.mrb[10].mxu1  ;;  %v2703_v57 = vpack.c.bf16 %v2307_v48, %v2305_v47  ;;  %v1456_v60 = vpop.f32.mrb[12].mxu0  ;;  %v2069_v0 = vmax.f32 %v1800_v51, 0.0 }
 0x247   :  { %v1804_v61 = vadd.f32 %v1803_v56, %v1451_v54  ;;  %v1805_v7 = vpop.f32.mrb[11].mxu1  ;;  %v1458_v3 = vpop.f32.mrb[13].mxu0  ;;  %v1457_v10 = vadd.f32 %v1456_v60, %v1147_v8  ;;  %v2308_v15 = vmul.f32 %v2212_v59, %v2068_v58  ;;  %v2165_v60 = vld [vmem:[#allocation3 + $0x48] sm:$0xff] }
 0x248   :  { %v1806_v6 = vadd.f32 %v1805_v7, %v1453_v55  ;;  %2704 = vmatprep.subr.bf16.mxu1 %v2703_v57  ;;  %v1459_v12 = vadd.f32 %v1458_v3, %v1147_v8  ;;  %v2309_v21 = vmul.f32 %v2213_v2, %v2069_v0  ;;  %v1162_v54 = vpop.permute.xlu1 %1161  ;;  %v2164_v57 = vld [vmem:[#allocation3 + $0x40] sm:$0xff] }
 0x249   :  { %v2070_v11 = vmax.f32 %v1804_v61, 0.0  ;;  %2706 = vmatpush1.bf16.msra.mxu1 %v2705_v53  ;;  %v2220_v3 = vunpack.c.l.bf16 %v2164_v57 }
 0x24a   :  { %v2071_v13 = vmax.f32 %v1806_v6, 0.0  ;;  %v1809_v14 = vpop.f32.mrb[12].mxu1  ;;  %v1462_v17 = vpop.f32.mrb[14].mxu0 }
 0x24b   :  { %v2310_v16 = vmul.f32 %v2214_v63, %v2070_v11  ;;  %v1810_v18 = vadd.f32 %v1809_v14, %v1457_v10  ;;  %v1811_v19 = vpop.f32.mrb[13].mxu1  ;;  %v1464_v24 = vpop.f32.mrb[15].mxu0  ;;  %v1463_v29 = vadd.f32 %v1462_v17, %v1152_v20  ;;  %v2222_v10 = vunpack.c.l.bf16 %v2165_v60 }
 0x24c   :  { %v2311_v22 = vmul.f32 %v2215_v9, %v2071_v13  ;;  %v1812_v25 = vadd.f32 %v1811_v19, %v1459_v12  ;;  %v1465_v30 = vadd.f32 %v1464_v24, %v1152_v20  ;;  %v1167_v12 = vpop.permute.xlu0 %1166  ;;  %v2221_v14 = vunpack.c.h.bf16 %v2164_v57 }
 0x24d   :  { %v2709_v28 = vpack.c.bf16 %v2310_v16, %v2308_v15  ;;  %v2072_v33 = vmax.f32 %v1810_v18, 0.0  ;;  %v2223_v17 = vunpack.c.h.bf16 %v2165_v60 }
 0x24e   :  { %v1815_v31 = vpop.f32.mrb[14].mxu1  ;;  %v2707_v32 = vpack.c.bf16 %v2311_v22, %v2309_v21  ;;  %v1468_v35 = vpop.f32.mrb[16].mxu0  ;;  %v2073_v40 = vmax.f32 %v1812_v25, 0.0 }
 0x24f   :  { %v1816_v36 = vadd.f32 %v1815_v31, %v1463_v29  ;;  %v1817_v38 = vpop.f32.mrb[15].mxu1  ;;  %v1470_v42 = vpop.f32.mrb[17].mxu0  ;;  %v1469_v45 = vadd.f32 %v1468_v35, %v1157_v39  ;;  %v2312_v49 = vmul.f32 %v2216_v34, %v2072_v33  ;;  %v2167_v35 = vld [vmem:[#allocation3 + $0x58] sm:$0xff] }
 0x250   :  { %v1818_v43 = vadd.f32 %v1817_v38, %v1465_v30  ;;  %2708 = vmatprep.subr.bf16.mxu1 %v2707_v32  ;;  %v1471_v5 = vadd.f32 %v1470_v42, %v1157_v39  ;;  %v2313_v55 = vmul.f32 %v2217_v41, %v2073_v40  ;;  %v1172_v29 = vpop.permute.xlu1 %1171  ;;  %v2166_v32 = vld [vmem:[#allocation3 + $0x50] sm:$0xff] }
 0x251   :  { %v2074_v46 = vmax.f32 %v1816_v36, 0.0  ;;  %2710 = vmatpush1.bf16.msra.mxu1 %v2709_v28  ;;  %v2224_v42 = vunpack.c.l.bf16 %v2166_v32 }
 0x252   :  { %v2075_v47 = vmax.f32 %v1818_v43, 0.0  ;;  %v1821_v48 = vpop.f32.mrb[16].mxu1  ;;  %v1474_v51 = vpop.f32.mrb[18].mxu0 }
 0x253   :  { %v2314_v50 = vmul.f32 %v2218_v37, %v2074_v46  ;;  %v1822_v52 = vadd.f32 %v1821_v48, %v1469_v45  ;;  %v1823_v53 = vpop.f32.mrb[17].mxu1  ;;  %v1476_v58 = vpop.f32.mrb[19].mxu0  ;;  %v1475_v63 = vadd.f32 %v1474_v51, %v1162_v54  ;;  %v2226_v45 = vunpack.c.l.bf16 %v2167_v35 }
 0x254   :  { %v2315_v56 = vmul.f32 %v2219_v44, %v2075_v47  ;;  %v1824_v59 = vadd.f32 %v1823_v53, %v1471_v5  ;;  %v1477_v7 = vadd.f32 %v1476_v58, %v1162_v54  ;;  %v1177_v5 = vpop.permute.xlu0 %1176  ;;  %v2225_v48 = vunpack.c.h.bf16 %v2166_v32 }
 0x255   :  { %v2713_v61 = vpack.c.bf16 %v2314_v50, %v2312_v49  ;;  %v2076_v2 = vmax.f32 %v1822_v52, 0.0  ;;  %v2227_v51 = vunpack.c.h.bf16 %v2167_v35 }
 0x256   :  { %v1827_v8 = vpop.f32.mrb[18].mxu1  ;;  %v2711_v0 = vpack.c.bf16 %v2315_v56, %v2313_v55  ;;  %v1480_v6 = vpop.f32.mrb[20].mxu0  ;;  %v2077_v13 = vmax.f32 %v1824_v59, 0.0 }
 0x257   :  { %v1828_v9 = vadd.f32 %v1827_v8, %v1475_v63  ;;  %v1829_v11 = vpop.f32.mrb[19].mxu1  ;;  %v1482_v15 = vpop.f32.mrb[21].mxu0  ;;  %v1481_v18 = vadd.f32 %v1480_v6, %v1167_v12  ;;  %v2316_v23 = vmul.f32 %v2220_v3, %v2076_v2  ;;  %v2169_v6 = vld [vmem:[#allocation3 + $0x68] sm:$0xff] }
 0x258   :  { %v1830_v16 = vadd.f32 %v1829_v11, %v1477_v7  ;;  %2712 = vmatprep.subr.bf16.mxu1 %v2711_v0  ;;  %v1483_v20 = vadd.f32 %v1482_v15, %v1167_v12  ;;  %v2317_v30 = vmul.f32 %v2221_v14, %v2077_v13  ;;  %v1182_v63 = vpop.permute.xlu1 %1181  ;;  %v2168_v0 = vld [vmem:[#allocation3 + $0x60] sm:$0xff] }
 0x259   :  { %v2078_v19 = vmax.f32 %v1828_v9, 0.0  ;;  %2714 = vmatpush1.bf16.msra.mxu1 %v2713_v61  ;;  %v2228_v15 = vunpack.c.l.bf16 %v2168_v0 }
 0x25a   :  { %v2079_v21 = vmax.f32 %v1830_v16, 0.0  ;;  %v1833_v22 = vpop.f32.mrb[20].mxu1  ;;  %v1486_v25 = vpop.f32.mrb[22].mxu0 }
 0x25b   :  { %v2318_v24 = vmul.f32 %v2222_v10, %v2078_v19  ;;  %v1834_v27 = vadd.f32 %v1833_v22, %v1481_v18  ;;  %v1835_v28 = vpop.f32.mrb[21].mxu1  ;;  %v1488_v33 = vpop.f32.mrb[23].mxu0  ;;  %v1487_v37 = vadd.f32 %v1486_v25, %v1172_v29  ;;  %v2230_v18 = vunpack.c.l.bf16 %v2169_v6 }
 0x25c   :  { %v2319_v31 = vmul.f32 %v2223_v17, %v2079_v21  ;;  %v1836_v34 = vadd.f32 %v1835_v28, %v1483_v20  ;;  %v1489_v38 = vadd.f32 %v1488_v33, %v1172_v29  ;;  %v1187_v20 = vpop.permute.xlu0 %1186  ;;  %v2229_v22 = vunpack.c.h.bf16 %v2168_v0 }
 0x25d   :  { %v2717_v36 = vpack.c.bf16 %v2318_v24, %v2316_v23  ;;  %v2080_v41 = vmax.f32 %v1834_v27, 0.0  ;;  %v2231_v25 = vunpack.c.h.bf16 %v2169_v6 }
 0x25e   :  { %v1839_v39 = vpop.f32.mrb[22].mxu1  ;;  %v2715_v40 = vpack.c.bf16 %v2319_v31, %v2317_v30  ;;  %v1492_v43 = vpop.f32.mrb[24].mxu0  ;;  %v2081_v47 = vmax.f32 %v1836_v34, 0.0 }
 0x25f   :  { %v1840_v44 = vadd.f32 %v1839_v39, %v1487_v37  ;;  %v1841_v46 = vpop.f32.mrb[23].mxu1  ;;  %v1494_v49 = vpop.f32.mrb[25].mxu0  ;;  %v1493_v52 = vadd.f32 %v1492_v43, %v1177_v5  ;;  %v2320_v57 = vmul.f32 %v2224_v42, %v2080_v41  ;;  %v2171_v43 = vld [vmem:[#allocation3 + $0x78] sm:$0xff] }
 0x260   :  { %v1842_v50 = vadd.f32 %v1841_v46, %v1489_v38  ;;  %2716 = vmatprep.subr.bf16.mxu1 %v2715_v40  ;;  %v1495_v54 = vadd.f32 %v1494_v49, %v1177_v5  ;;  %v2321_v7 = vmul.f32 %v2225_v48, %v2081_v47  ;;  %v1192_v37 = vpop.permute.xlu1 %1191  ;;  %v2170_v40 = vld [vmem:[#allocation3 + $0x70] sm:$0xff] }
 0x261   :  { %v2082_v53 = vmax.f32 %v1840_v44, 0.0  ;;  %2718 = vmatpush1.bf16.msra.mxu1 %v2717_v36  ;;  %v2232_v49 = vunpack.c.l.bf16 %v2170_v40 }
 0x262   :  { %v2083_v55 = vmax.f32 %v1842_v50, 0.0  ;;  %v1845_v56 = vpop.f32.mrb[24].mxu1  ;;  %v1498_v59 = vpop.f32.mrb[26].mxu0 }
 0x263   :  { %v2322_v58 = vmul.f32 %v2226_v45, %v2082_v53  ;;  %v1846_v60 = vadd.f32 %v1845_v56, %v1493_v52  ;;  %v1847_v61 = vpop.f32.mrb[25].mxu1  ;;  %v1500_v2 = vpop.f32.mrb[27].mxu0  ;;  %v1499_v10 = vadd.f32 %v1498_v59, %v1182_v63  ;;  %v2234_v52 = vunpack.c.l.bf16 %v2171_v43 }
 0x264   :  { %v2323_v8 = vmul.f32 %v2227_v51, %v2083_v55  ;;  %v1848_v3 = vadd.f32 %v1847_v61, %v1495_v54  ;;  %v1501_v11 = vadd.f32 %v1500_v2, %v1182_v63  ;;  %v1197_v54 = vpop.permute.xlu0 %1196  ;;  %v2233_v56 = vunpack.c.h.bf16 %v2170_v40 }
 0x265   :  { %v2721_v9 = vpack.c.bf16 %v2322_v58, %v2320_v57  ;;  %v2084_v14 = vmax.f32 %v1846_v60, 0.0  ;;  %v2235_v59 = vunpack.c.h.bf16 %v2171_v43 }
 0x266   :  { %v1851_v12 = vpop.f32.mrb[26].mxu1  ;;  %v2719_v13 = vpack.c.bf16 %v2323_v8, %v2321_v7  ;;  %v1504_v16 = vpop.f32.mrb[28].mxu0  ;;  %v2085_v21 = vmax.f32 %v1848_v3, 0.0 }
 0x267   :  { %v1852_v17 = vadd.f32 %v1851_v12, %v1499_v10  ;;  %v1853_v19 = vpop.f32.mrb[27].mxu1  ;;  %v1506_v23 = vpop.f32.mrb[29].mxu0  ;;  %v1505_v27 = vadd.f32 %v1504_v16, %v1187_v20  ;;  %v2324_v32 = vmul.f32 %v2228_v15, %v2084_v14  ;;  %v2173_v16 = vld [vmem:[#allocation3 + $0x88] sm:$0xff] }
 0x268   :  { %v1854_v24 = vadd.f32 %v1853_v19, %v1501_v11  ;;  %2720 = vmatprep.subr.bf16.mxu1 %v2719_v13  ;;  %v1507_v29 = vadd.f32 %v1506_v23, %v1187_v20  ;;  %v2325_v38 = vmul.f32 %v2229_v22, %v2085_v21  ;;  %v1202_v10 = vpop.permute.xlu1 %1201  ;;  %v2172_v13 = vld [vmem:[#allocation3 + $0x80] sm:$0xff] }
 0x269   :  { %v2086_v28 = vmax.f32 %v1852_v17, 0.0  ;;  %2722 = vmatpush1.bf16.msra.mxu1 %v2721_v9  ;;  %v2236_v23 = vunpack.c.l.bf16 %v2172_v13 }
 0x26a   :  { %v2087_v30 = vmax.f32 %v1854_v24, 0.0  ;;  %v1857_v31 = vpop.f32.mrb[28].mxu1  ;;  %v1510_v34 = vpop.f32.mrb[30].mxu0 }
 0x26b   :  { %v2326_v33 = vmul.f32 %v2230_v18, %v2086_v28  ;;  %v1858_v35 = vadd.f32 %v1857_v31, %v1505_v27  ;;  %v1859_v36 = vpop.f32.mrb[29].mxu1  ;;  %v1512_v41 = vpop.f32.mrb[31].mxu0  ;;  %v1511_v45 = vadd.f32 %v1510_v34, %v1192_v37  ;;  %v2238_v27 = vunpack.c.l.bf16 %v2173_v16 }
 0x26c   :  { %v2327_v39 = vmul.f32 %v2231_v25, %v2087_v30  ;;  %v1860_v42 = vadd.f32 %v1859_v36, %v1507_v29  ;;  %v1513_v46 = vadd.f32 %v1512_v41, %v1192_v37  ;;  %v1207_v29 = vpop.permute.xlu0 %1206  ;;  %v2237_v31 = vunpack.c.h.bf16 %v2172_v13 }
 0x26d   :  { %v2725_v44 = vpack.c.bf16 %v2326_v33, %v2324_v32  ;;  %v2088_v48 = vmax.f32 %v1858_v35, 0.0  ;;  %v2239_v34 = vunpack.c.h.bf16 %v2173_v16 }
 0x26e   :  { %v1863_v5 = vpop.f32.mrb[30].mxu1  ;;  %v2723_v47 = vpack.c.bf16 %v2327_v39, %v2325_v38  ;;  %v1516_v50 = vpop.f32.mrb[32].mxu0  ;;  %v2089_v55 = vmax.f32 %v1860_v42, 0.0 }
 0x26f   :  { %v1864_v51 = vadd.f32 %v1863_v5, %v1511_v45  ;;  %v1865_v53 = vpop.f32.mrb[31].mxu1  ;;  %v1518_v57 = vpop.f32.mrb[33].mxu0  ;;  %v1517_v60 = vadd.f32 %v1516_v50, %v1197_v54  ;;  %v2328_v0 = vmul.f32 %v2232_v49, %v2088_v48  ;;  %v2175_v50 = vld [vmem:[#allocation3 + $0x98] sm:$0xff] }
 0x270   :  { %v1866_v58 = vadd.f32 %v1865_v53, %v1513_v46  ;;  %2724 = vmatprep.subr.bf16.mxu1 %v2723_v47  ;;  %v1519_v63 = vadd.f32 %v1518_v57, %v1197_v54  ;;  %v2329_v11 = vmul.f32 %v2233_v56, %v2089_v55  ;;  %v1212_v45 = vpop.permute.xlu1 %1211  ;;  %v2174_v47 = vld [vmem:[#allocation3 + $0x90] sm:$0xff] }
 0x271   :  { %v2090_v61 = vmax.f32 %v1864_v51, 0.0  ;;  %2726 = vmatpush1.bf16.msra.mxu1 %v2725_v44  ;;  %v2240_v57 = vunpack.c.l.bf16 %v2174_v47 }
 0x272   :  { %v2091_v7 = vmax.f32 %v1866_v58, 0.0  ;;  %v1869_v8 = vpop.f32.mrb[32].mxu1  ;;  %v1522_v3 = vpop.f32.mrb[34].mxu0 }
 0x273   :  { %v2330_v2 = vmul.f32 %v2234_v52, %v2090_v61  ;;  %v1870_v6 = vadd.f32 %v1869_v8, %v1517_v60  ;;  %v1871_v9 = vpop.f32.mrb[33].mxu1  ;;  %v1524_v14 = vpop.f32.mrb[35].mxu0  ;;  %v1523_v18 = vadd.f32 %v1522_v3, %v1202_v10  ;;  %v2242_v60 = vunpack.c.l.bf16 %v2175_v50 }
 0x274   :  { %v2331_v12 = vmul.f32 %v2235_v59, %v2091_v7  ;;  %v1872_v15 = vadd.f32 %v1871_v9, %v1519_v63  ;;  %v1525_v19 = vadd.f32 %v1524_v14, %v1202_v10  ;;  %v1217_v63 = vpop.permute.xlu0 %1216  ;;  %v2241_v8 = vunpack.c.h.bf16 %v2174_v47 }
 0x275   :  { %v2729_v17 = vpack.c.bf16 %v2330_v2, %v2328_v0  ;;  %v2092_v22 = vmax.f32 %v1870_v6, 0.0  ;;  %v2243_v3 = vunpack.c.h.bf16 %v2175_v50 }
 0x276   :  { %v1875_v20 = vpop.f32.mrb[34].mxu1  ;;  %v2727_v21 = vpack.c.bf16 %v2331_v12, %v2329_v11  ;;  %v1528_v24 = vpop.f32.mrb[36].mxu0  ;;  %v2093_v30 = vmax.f32 %v1872_v15, 0.0 }
 0x277   :  { %v1876_v25 = vadd.f32 %v1875_v20, %v1523_v18  ;;  %v1877_v28 = vpop.f32.mrb[35].mxu1  ;;  %v1530_v32 = vpop.f32.mrb[37].mxu0  ;;  %v1529_v35 = vadd.f32 %v1528_v24, %v1207_v29  ;;  %v2332_v40 = vmul.f32 %v2236_v23, %v2092_v22  ;;  %v2177_v24 = vld [vmem:[#allocation3 + $0xa8] sm:$0xff] }
 0x278   :  { %v1878_v33 = vadd.f32 %v1877_v28, %v1525_v19  ;;  %2728 = vmatprep.subr.bf16.mxu1 %v2727_v21  ;;  %v1531_v37 = vadd.f32 %v1530_v32, %v1207_v29  ;;  %v2333_v46 = vmul.f32 %v2237_v31, %v2093_v30  ;;  %v1222_v18 = vpop.permute.xlu1 %1221  ;;  %v2176_v21 = vld [vmem:[#allocation3 + $0xa0] sm:$0xff] }
 0x279   :  { %v2094_v36 = vmax.f32 %v1876_v25, 0.0  ;;  %2730 = vmatpush1.bf16.msra.mxu1 %v2729_v17  ;;  %v2244_v32 = vunpack.c.l.bf16 %v2176_v21 }
 0x27a   :  { %v2095_v38 = vmax.f32 %v1878_v33, 0.0  ;;  %v1881_v39 = vpop.f32.mrb[36].mxu1  ;;  %v1534_v42 = vpop.f32.mrb[38].mxu0 }
 0x27b   :  { %v2334_v41 = vmul.f32 %v2238_v27, %v2094_v36  ;;  %v1882_v43 = vadd.f32 %v1881_v39, %v1529_v35  ;;  %v1883_v44 = vpop.f32.mrb[37].mxu1  ;;  %v1536_v48 = vpop.f32.mrb[39].mxu0  ;;  %v1535_v52 = vadd.f32 %v1534_v42, %v1212_v45  ;;  %v2246_v35 = vunpack.c.l.bf16 %v2177_v24 }
 0x27c   :  { %v2335_v5 = vmul.f32 %v2239_v34, %v2095_v38  ;;  %v1884_v49 = vadd.f32 %v1883_v44, %v1531_v37  ;;  %v1537_v53 = vadd.f32 %v1536_v48, %v1212_v45  ;;  %v1227_v37 = vpop.permute.xlu0 %1226  ;;  %v2245_v39 = vunpack.c.h.bf16 %v2176_v21 }
 0x27d   :  { %v2733_v51 = vpack.c.bf16 %v2334_v41, %v2332_v40  ;;  %v2096_v56 = vmax.f32 %v1882_v43, 0.0  ;;  %v2247_v42 = vunpack.c.h.bf16 %v2177_v24 }
 0x27e   :  { %v1887_v54 = vpop.f32.mrb[38].mxu1  ;;  %v2731_v55 = vpack.c.bf16 %v2335_v5, %v2333_v46  ;;  %v1540_v58 = vpop.f32.mrb[40].mxu0  ;;  %v2097_v7 = vmax.f32 %v1884_v49, 0.0 }
 0x27f   :  { %v1888_v59 = vadd.f32 %v1887_v54, %v1535_v52  ;;  %v1889_v61 = vpop.f32.mrb[39].mxu1  ;;  %v1542_v0 = vpop.f32.mrb[41].mxu0  ;;  %v1541_v6 = vadd.f32 %v1540_v58, %v1217_v63  ;;  %v2336_v13 = vmul.f32 %v2240_v57, %v2096_v56  ;;  %v2179_v58 = vld [vmem:[#allocation3 + $0xb8] sm:$0xff] }
 0x280   :  { %v1890_v2 = vadd.f32 %v1889_v61, %v1537_v53  ;;  %2732 = vmatprep.subr.bf16.mxu1 %v2731_v55  ;;  %v1543_v10 = vadd.f32 %v1542_v0, %v1217_v63  ;;  %v2337_v19 = vmul.f32 %v2241_v8, %v2097_v7  ;;  %v1232_v52 = vpop.permute.xlu1 %1231  ;;  %v2178_v55 = vld [vmem:[#allocation3 + $0xb0] sm:$0xff] }
 0x281   :  { %v2098_v9 = vmax.f32 %v1888_v59, 0.0  ;;  %2734 = vmatpush1.bf16.msra.mxu1 %v2733_v51  ;;  %v2248_v0 = vunpack.c.l.bf16 %v2178_v55 }
 0x282   :  { %v2099_v11 = vmax.f32 %v1890_v2, 0.0  ;;  %v1893_v12 = vpop.f32.mrb[40].mxu1  ;;  %v1546_v15 = vpop.f32.mrb[42].mxu0 }
 0x283   :  { %v2338_v14 = vmul.f32 %v2242_v60, %v2098_v9  ;;  %v1894_v16 = vadd.f32 %v1893_v12, %v1541_v6  ;;  %v1895_v17 = vpop.f32.mrb[41].mxu1  ;;  %v1548_v22 = vpop.f32.mrb[43].mxu0  ;;  %v1547_v27 = vadd.f32 %v1546_v15, %v1222_v18  ;;  %v2250_v6 = vunpack.c.l.bf16 %v2179_v58 }
 0x284   :  { %v2339_v20 = vmul.f32 %v2243_v3, %v2099_v11  ;;  %v1896_v23 = vadd.f32 %v1895_v17, %v1543_v10  ;;  %v1549_v28 = vadd.f32 %v1548_v22, %v1222_v18  ;;  %v1237_v10 = vpop.permute.xlu0 %1236  ;;  %v2249_v12 = vunpack.c.h.bf16 %v2178_v55 }
 0x285   :  { %v2737_v25 = vpack.c.bf16 %v2338_v14, %v2336_v13  ;;  %v2100_v31 = vmax.f32 %v1894_v16, 0.0  ;;  %v2251_v15 = vunpack.c.h.bf16 %v2179_v58 }
 0x286   :  { %v1899_v29 = vpop.f32.mrb[42].mxu1  ;;  %v2735_v30 = vpack.c.bf16 %v2339_v20, %v2337_v19  ;;  %v1552_v33 = vpop.f32.mrb[44].mxu0  ;;  %v2101_v38 = vmax.f32 %v1896_v23, 0.0 }
 0x287   :  { %v1900_v34 = vadd.f32 %v1899_v29, %v1547_v27  ;;  %v1901_v36 = vpop.f32.mrb[43].mxu1  ;;  %v1554_v40 = vpop.f32.mrb[45].mxu0  ;;  %v1553_v43 = vadd.f32 %v1552_v33, %v1227_v37  ;;  %v2340_v47 = vmul.f32 %v2244_v32, %v2100_v31  ;;  %v2181_v33 = vld [vmem:[#allocation3 + $0xc8] sm:$0xff] }
 0x288   :  { %v1902_v41 = vadd.f32 %v1901_v36, %v1549_v28  ;;  %2736 = vmatprep.subr.bf16.mxu1 %v2735_v30  ;;  %v1555_v45 = vadd.f32 %v1554_v40, %v1227_v37  ;;  %v2341_v53 = vmul.f32 %v2245_v39, %v2101_v38  ;;  %v1242_v27 = vpop.permute.xlu1 %1241  ;;  %v2180_v30 = vld [vmem:[#allocation3 + $0xc0] sm:$0xff] }
 0x289   :  { %v2102_v44 = vmax.f32 %v1900_v34, 0.0  ;;  %2738 = vmatpush1.bf16.msra.mxu1 %v2737_v25  ;;  %v2252_v40 = vunpack.c.l.bf16 %v2180_v30 }
 0x28a   :  { %v2103_v46 = vmax.f32 %v1902_v41, 0.0  ;;  %v1905_v5 = vpop.f32.mrb[44].mxu1  ;;  %v1558_v49 = vpop.f32.mrb[46].mxu0 }
 0x28b   :  { %v2342_v48 = vmul.f32 %v2246_v35, %v2102_v44  ;;  %v1906_v50 = vadd.f32 %v1905_v5, %v1553_v43  ;;  %v1907_v51 = vpop.f32.mrb[45].mxu1  ;;  %v1560_v56 = vpop.f32.mrb[47].mxu0  ;;  %v1559_v60 = vadd.f32 %v1558_v49, %v1232_v52  ;;  %v2254_v43 = vunpack.c.l.bf16 %v2181_v33 }
 0x28c   :  { %v2343_v54 = vmul.f32 %v2247_v42, %v2103_v46  ;;  %v1908_v57 = vadd.f32 %v1907_v51, %v1555_v45  ;;  %v1561_v61 = vadd.f32 %v1560_v56, %v1232_v52  ;;  %v1247_v45 = vpop.permute.xlu0 %1246  ;;  %v2253_v5 = vunpack.c.h.bf16 %v2180_v30 }
 0x28d   :  { %v2741_v59 = vpack.c.bf16 %v2342_v48, %v2340_v47  ;;  %v2104_v8 = vmax.f32 %v1906_v50, 0.0  ;;  %v2255_v49 = vunpack.c.h.bf16 %v2181_v33 }
 0x28e   :  { %v1911_v63 = vpop.f32.mrb[46].mxu1  ;;  %v2739_v7 = vpack.c.bf16 %v2343_v54, %v2341_v53  ;;  %v1564_v2 = vpop.f32.mrb[48].mxu0  ;;  %v2105_v11 = vmax.f32 %v1908_v57, 0.0 }
 0x28f   :  { %v1912_v3 = vadd.f32 %v1911_v63, %v1559_v60  ;;  %v1913_v9 = vpop.f32.mrb[47].mxu1  ;;  %v1566_v13 = vpop.f32.mrb[49].mxu0  ;;  %v1565_v16 = vadd.f32 %v1564_v2, %v1237_v10  ;;  %v2344_v21 = vmul.f32 %v2248_v0, %v2104_v8  ;;  %v2183_v2 = vld [vmem:[#allocation3 + $0xd8] sm:$0xff] }
 0x290   :  { %v1914_v14 = vadd.f32 %v1913_v9, %v1561_v61  ;;  %2740 = vmatprep.subr.bf16.mxu1 %v2739_v7  ;;  %v1567_v18 = vadd.f32 %v1566_v13, %v1237_v10  ;;  %v2345_v28 = vmul.f32 %v2249_v12, %v2105_v11  ;;  %v1252_v60 = vpop.permute.xlu1 %1251  ;;  %v2182_v7 = vld [vmem:[#allocation3 + $0xd0] sm:$0xff] }
 0x291   :  { %v2106_v17 = vmax.f32 %v1912_v3, 0.0  ;;  %2742 = vmatpush1.bf16.msra.mxu1 %v2741_v59  ;;  %v2256_v13 = vunpack.c.l.bf16 %v2182_v7 }
 0x292   :  { %v2107_v19 = vmax.f32 %v1914_v14, 0.0  ;;  %v1917_v20 = vpop.f32.mrb[48].mxu1  ;;  %v1570_v23 = vpop.f32.mrb[50].mxu0 }
 0x293   :  { %v2346_v22 = vmul.f32 %v2250_v6, %v2106_v17  ;;  %v1918_v24 = vadd.f32 %v1917_v20, %v1565_v16  ;;  %v1919_v25 = vpop.f32.mrb[49].mxu1  ;;  %v1572_v31 = vpop.f32.mrb[51].mxu0  ;;  %v1571_v35 = vadd.f32 %v1570_v23, %v1242_v27  ;;  %v2258_v16 = vunpack.c.l.bf16 %v2183_v2 }
 0x294   :  { %v2347_v29 = vmul.f32 %v2251_v15, %v2107_v19  ;;  %v1920_v32 = vadd.f32 %v1919_v25, %v1567_v18  ;;  %v1573_v36 = vadd.f32 %v1572_v31, %v1242_v27  ;;  %v1257_v18 = vpop.permute.xlu0 %1256  ;;  %v2257_v20 = vunpack.c.h.bf16 %v2182_v7 }
 0x295   :  { %v2745_v34 = vpack.c.bf16 %v2346_v22, %v2344_v21  ;;  %v2108_v39 = vmax.f32 %v1918_v24, 0.0  ;;  %v2259_v23 = vunpack.c.h.bf16 %v2183_v2 }
 0x296   :  { %v1923_v37 = vpop.f32.mrb[50].mxu1  ;;  %v2743_v38 = vpack.c.bf16 %v2347_v29, %v2345_v28  ;;  %v1576_v41 = vpop.f32.mrb[52].mxu0  ;;  %v2109_v46 = vmax.f32 %v1920_v32, 0.0 }
 0x297   :  { %v1924_v42 = vadd.f32 %v1923_v37, %v1571_v35  ;;  %v1925_v44 = vpop.f32.mrb[51].mxu1  ;;  %v1578_v47 = vpop.f32.mrb[53].mxu0  ;;  %v1577_v50 = vadd.f32 %v1576_v41, %v1247_v45  ;;  %v2348_v55 = vmul.f32 %v2252_v40, %v2108_v39  ;;  %v2185_v41 = vld [vmem:[#allocation3 + $0xe8] sm:$0xff] }
 0x298   :  { %v1926_v48 = vadd.f32 %v1925_v44, %v1573_v36  ;;  %2744 = vmatprep.subr.bf16.mxu1 %v2743_v38  ;;  %v1579_v52 = vadd.f32 %v1578_v47, %v1247_v45  ;;  %v2349_v61 = vmul.f32 %v2253_v5, %v2109_v46  ;;  %v1262_v35 = vpop.permute.xlu1 %1261  ;;  %v2184_v38 = vld [vmem:[#allocation3 + $0xe0] sm:$0xff] }
 0x299   :  { %v2110_v51 = vmax.f32 %v1924_v42, 0.0  ;;  %2746 = vmatpush1.bf16.msra.mxu1 %v2745_v34  ;;  %v2260_v47 = vunpack.c.l.bf16 %v2184_v38 }
 0x29a   :  { %v2111_v53 = vmax.f32 %v1926_v48, 0.0  ;;  %v1929_v54 = vpop.f32.mrb[52].mxu1  ;;  %v1582_v57 = vpop.f32.mrb[54].mxu0 }
 0x29b   :  { %v2350_v56 = vmul.f32 %v2254_v43, %v2110_v51  ;;  %v1930_v58 = vadd.f32 %v1929_v54, %v1577_v50  ;;  %v1931_v59 = vpop.f32.mrb[53].mxu1  ;;  %v1584_v8 = vpop.f32.mrb[55].mxu0  ;;  %v1583_v6 = vadd.f32 %v1582_v57, %v1252_v60  ;;  %v2262_v50 = vunpack.c.l.bf16 %v2185_v41 }
 0x29c   :  { %v2351_v63 = vmul.f32 %v2255_v49, %v2111_v53  ;;  %v1932_v0 = vadd.f32 %v1931_v59, %v1579_v52  ;;  %v1585_v9 = vadd.f32 %v1584_v8, %v1252_v60  ;;  %v1267_v52 = vpop.permute.xlu0 %1266  ;;  %v2261_v54 = vunpack.c.h.bf16 %v2184_v38 }
 0x29d   :  { %v2749_v3 = vpack.c.bf16 %v2350_v56, %v2348_v55  ;;  %v2112_v12 = vmax.f32 %v1930_v58, 0.0  ;;  %v2263_v57 = vunpack.c.h.bf16 %v2185_v41 }
 0x29e   :  { %v1935_v10 = vpop.f32.mrb[54].mxu1  ;;  %v2747_v11 = vpack.c.bf16 %v2351_v63, %v2349_v61  ;;  %v1588_v14 = vpop.f32.mrb[56].mxu0  ;;  %v2113_v19 = vmax.f32 %v1932_v0, 0.0 }
 0x29f   :  { %v1936_v15 = vadd.f32 %v1935_v10, %v1583_v6  ;;  %v1937_v17 = vpop.f32.mrb[55].mxu1  ;;  %v1590_v21 = vpop.f32.mrb[57].mxu0  ;;  %v1589_v24 = vadd.f32 %v1588_v14, %v1257_v18  ;;  %v2352_v30 = vmul.f32 %v2256_v13, %v2112_v12  ;;  %v2187_v14 = vld [vmem:[#allocation3 + $0xf8] sm:$0xff] }
 0x2a0   :  { %v1938_v22 = vadd.f32 %v1937_v17, %v1585_v9  ;;  %2748 = vmatprep.subr.bf16.mxu1 %v2747_v11  ;;  %v1591_v27 = vadd.f32 %v1590_v21, %v1257_v18  ;;  %v2353_v36 = vmul.f32 %v2257_v20, %v2113_v19  ;;  %v1272_v6 = vpop.permute.xlu1 %1271  ;;  %v2186_v11 = vld [vmem:[#allocation3 + $0xf0] sm:$0xff] }
 0x2a1   :  { %v2114_v25 = vmax.f32 %v1936_v15, 0.0  ;;  %2750 = vmatpush1.bf16.msra.mxu1 %v2749_v3  ;;  %v2264_v21 = vunpack.c.l.bf16 %v2186_v11 }
 0x2a2   :  { %v2115_v28 = vmax.f32 %v1938_v22, 0.0  ;;  %v1941_v29 = vpop.f32.mrb[56].mxu1  ;;  %v1594_v32 = vpop.f32.mrb[58].mxu0 }
 0x2a3   :  { %v2354_v31 = vmul.f32 %v2258_v16, %v2114_v25  ;;  %v1942_v33 = vadd.f32 %v1941_v29, %v1589_v24  ;;  %v1943_v34 = vpop.f32.mrb[57].mxu1  ;;  %v1596_v39 = vpop.f32.mrb[59].mxu0  ;;  %v1595_v43 = vadd.f32 %v1594_v32, %v1262_v35  ;;  %v2266_v24 = vunpack.c.l.bf16 %v2187_v14 }
 0x2a4   :  { %v2355_v37 = vmul.f32 %v2259_v23, %v2115_v28  ;;  %v1944_v40 = vadd.f32 %v1943_v34, %v1591_v27  ;;  %v1597_v44 = vadd.f32 %v1596_v39, %v1262_v35  ;;  %v1277_v27 = vpop.permute.xlu0 %1276  ;;  %v2265_v29 = vunpack.c.h.bf16 %v2186_v11 }
 0x2a5   :  { %v2753_v42 = vpack.c.bf16 %v2354_v31, %v2352_v30  ;;  %v2116_v5 = vmax.f32 %v1942_v33, 0.0  ;;  %v2267_v32 = vunpack.c.h.bf16 %v2187_v14 }
 0x2a6   :  { %v1947_v45 = vpop.f32.mrb[58].mxu1  ;;  %v2751_v46 = vpack.c.bf16 %v2355_v37, %v2353_v36  ;;  %v1600_v48 = vpop.f32.mrb[60].mxu0  ;;  %v2117_v53 = vmax.f32 %v1944_v40, 0.0 }
 0x2a7   :  { %v1948_v49 = vadd.f32 %v1947_v45, %v1595_v43  ;;  %v1949_v51 = vpop.f32.mrb[59].mxu1  ;;  %v1602_v55 = vpop.f32.mrb[61].mxu0  ;;  %v1601_v58 = vadd.f32 %v1600_v48, %v1267_v52  ;;  %v2356_v7 = vmul.f32 %v2260_v47, %v2116_v5  ;;  %v2189_v48 = vld [vmem:[#allocation3 + $0x108] sm:$0xff] }
 0x2a8   :  { %v1950_v56 = vadd.f32 %v1949_v51, %v1597_v44  ;;  %2752 = vmatprep.subr.bf16.mxu1 %v2751_v46  ;;  %v1603_v60 = vadd.f32 %v1602_v55, %v1267_v52  ;;  %v2357_v9 = vmul.f32 %v2261_v54, %v2117_v53  ;;  %v1282_v44 = vpop.permute.xlu1 %1281 }
 0x2a9   :  { %v2118_v59 = vmax.f32 %v1948_v49, 0.0  ;;  %2754 = vmatpush1.bf16.msra.mxu1 %v2753_v42  ;;  %v2188_v42 = vld [vmem:[#allocation3 + $0x100] sm:$0xff] }
 0x2aa   :  { %v2119_v61 = vmax.f32 %v1950_v56, 0.0  ;;  %v1953_v63 = vpop.f32.mrb[60].mxu1  ;;  %v1606_v0 = vpop.f32.mrb[62].mxu0  ;;  %v2268_v51 = vunpack.c.l.bf16 %v2188_v42  ;;  %v2269_v56 = vunpack.c.h.bf16 %v2188_v42 }
 0x2ab   :  { %v2358_v8 = vmul.f32 %v2262_v50, %v2118_v59  ;;  %v1954_v2 = vadd.f32 %v1953_v63, %v1601_v58  ;;  %v1955_v3 = vpop.f32.mrb[61].mxu1  ;;  %v1608_v12 = vpop.f32.mrb[63].mxu0  ;;  %v1607_v16 = vadd.f32 %v1606_v0, %v1272_v6  ;;  %v2270_v59 = vunpack.c.l.bf16 %v2189_v48 }
 0x2ac   :  { %v2359_v10 = vmul.f32 %v2263_v57, %v2119_v61  ;;  %v1956_v13 = vadd.f32 %v1955_v3, %v1603_v60  ;;  %v1609_v17 = vadd.f32 %v1608_v12, %v1272_v6  ;;  %v1287_v61 = vpop.permute.xlu0 %1286  ;;  %v2271_v0 = vunpack.c.h.bf16 %v2189_v48 }
 0x2ad   :  { %v2757_v15 = vpack.c.bf16 %v2358_v8, %v2356_v7  ;;  %v2120_v20 = vmax.f32 %v1954_v2, 0.0  ;;  %v4149_v2 = vld [vmem:[%s4176_s5] sm:$0x7]  ;;  %s3055_s5 = smov [#allocation6]  }
 0x2ae   :  { %v1959_v18 = vpop.f32.mrb[62].mxu1  ;;  %v2755_v19 = vpack.c.bf16 %v2359_v10, %v2357_v9  ;;  %v1612_v22 = vpop.f32.mrb[64].mxu0  ;;  %v2121_v28 = vmax.f32 %v1956_v13, 0.0  ;;  %v2411_v3 = vrot.slane %v4149_v2, %v3312_v4  ;;  %s2594_s16 = sshll.u32 %s3055_s5, 4  ;;  %s2595_s16 = int_to_ptr.vmem [resolvable:$true] %s2594_s16 }
 0x2af   :  { %v1960_v23 = vadd.f32 %v1959_v18, %v1607_v16  ;;  %v1961_v25 = vpop.f32.mrb[63].mxu1  ;;  %v1614_v30 = vpop.f32.mrb[65].mxu0  ;;  %v1613_v33 = vadd.f32 %v1612_v22, %v1277_v27  ;;  %v2360_v38 = vmul.f32 %v2264_v21, %v2120_v20  ;;  %v2190_v21 = vld [vmem:[#allocation3 + $0x110] sm:$0xff]  ;;  %s3023_s17 = scalar_lea.vmem %s2595_s16, 32  ;;  %p3028_p9 = scmp.lt.s32.totalorder %s2595_s16, %s2595_s16 }
 0x2b0   :  { %v1962_v31 = vadd.f32 %v1961_v25, %v1609_v17  ;;  %2756 = vmatprep.subr.bf16.mxu1 %v2755_v19  ;;  %v1615_v35 = vadd.f32 %v1614_v30, %v1277_v27  ;;  %v2361_v45 = vmul.f32 %v2265_v29, %v2121_v28  ;;  %v1292_v18 = vpop.permute.xlu1 %1291  ;;  %p3024_p8 = scmp.ne.s32.totalorder %s2595_s16, %s3023_s17  ;;  %p3029_p10 = scmp.lt.s32.totalorder %s3023_s17, %s3023_s17 }
 0x2b1   :  { %v2122_v34 = vmax.f32 %v1960_v23, 0.0  ;;  %2758 = vmatpush1.bf16.msra.mxu1 %v2757_v15 }
 0x2b2   :  { %v2123_v36 = vmax.f32 %v1962_v31, 0.0  ;;  %v1965_v37 = vpop.f32.mrb[64].mxu1  ;;  %v1618_v40 = vpop.f32.mrb[66].mxu0  ;;  %p3030_p11 = por %p3029_p10, %p3028_p9 }
 0x2b3   :  { %v2362_v39 = vmul.f32 %v2266_v24, %v2122_v34  ;;  %v1966_v41 = vadd.f32 %v1965_v37, %v1613_v33  ;;  %v1967_v43 = vpop.f32.mrb[65].mxu1  ;;  %v1620_v5 = vpop.f32.mrb[67].mxu0  ;;  %v1619_v50 = vadd.f32 %v1618_v40, %v1282_v44  ;;  %v2191_v24 = vld [vmem:[#allocation3 + $0x118] sm:$0xff] }
 0x2b4   :  { %v2363_v46 = vmul.f32 %v2267_v32, %v2123_v36  ;;  %v1968_v47 = vadd.f32 %v1967_v43, %v1615_v35  ;;  %v1621_v52 = vadd.f32 %v1620_v5, %v1282_v44  ;;  %v2272_v32 = vunpack.c.l.bf16 %v2190_v21  ;;  %v1297_v37 = vpop.permute.xlu0 %1296  ;;  %p3031_p12 = pnand %p3030_p11, %p3024_p8 }
 0x2b5   :  { %v2761_v49 = vpack.c.bf16 %v2362_v39, %v2360_v38  ;;  %v2124_v55 = vmax.f32 %v1966_v41, 0.0  ;;  %v2274_v35 = vunpack.c.l.bf16 %v2191_v24  ;;  %v2273_v39 = vunpack.c.h.bf16 %v2190_v21 }
 0x2b6   :  { %v1971_v53 = vpop.f32.mrb[66].mxu1  ;;  %v2759_v54 = vpack.c.bf16 %v2363_v46, %v2361_v45  ;;  %v1624_v57 = vpop.f32.mrb[68].mxu0  ;;  %v2125_v63 = vmax.f32 %v1968_v47, 0.0  ;;  %v2275_v42 = vunpack.c.h.bf16 %v2191_v24 }
 0x2b7   :  { %v1972_v58 = vadd.f32 %v1971_v53, %v1619_v50  ;;  %v1973_v60 = vpop.f32.mrb[67].mxu1  ;;  %v1626_v7 = vpop.f32.mrb[69].mxu0  ;;  %v1625_v6 = vadd.f32 %v1624_v57, %v1287_v61  ;;  %v2364_v13 = vmul.f32 %v2268_v51, %v2124_v55  ;;  %v2193_v57 = vld [vmem:[#allocation3 + $0x128] sm:$0xff] }
 0x2b8   :  { %v1974_v8 = vadd.f32 %v1973_v60, %v1621_v52  ;;  %2760 = vmatprep.subr.bf16.mxu1 %v2759_v54  ;;  %v1627_v10 = vadd.f32 %v1626_v7, %v1287_v61  ;;  %v2365_v19 = vmul.f32 %v2269_v56, %v2125_v63  ;;  %v1302_v51 = vpop.permute.xlu1 %1301  ;;  %v2192_v54 = vld [vmem:[#allocation3 + $0x120] sm:$0xff] }
 0x2b9   :  { %v2126_v9 = vmax.f32 %v1972_v58, 0.0  ;;  %2762 = vmatpush1.bf16.msra.mxu1 %v2761_v49 }
 0x2ba   :  { %v2127_v11 = vmax.f32 %v1974_v8, 0.0  ;;  %v1977_v12 = vpop.f32.mrb[68].mxu1  ;;  %v1630_v15 = vpop.f32.mrb[70].mxu0  ;;  %v2276_v8 = vunpack.c.l.bf16 %v2192_v54 }
 0x2bb   :  { %v2366_v14 = vmul.f32 %v2270_v59, %v2126_v9  ;;  %v1978_v16 = vadd.f32 %v1977_v12, %v1625_v6  ;;  %v1979_v17 = vpop.f32.mrb[69].mxu1  ;;  %v1632_v22 = vpop.f32.mrb[71].mxu0  ;;  %v1631_v27 = vadd.f32 %v1630_v15, %v1292_v18  ;;  %v2278_v6 = vunpack.c.l.bf16 %v2193_v57 }
 0x2bc   :  { %v2367_v20 = vmul.f32 %v2271_v0, %v2127_v11  ;;  %v1980_v23 = vadd.f32 %v1979_v17, %v1627_v10  ;;  %2488 = vmatmul.mubr.f32.vlgmr.msra.gmra.mrb[96].mxu1 %v2411_v3  ;;  %v1633_v28 = vadd.f32 %v1632_v22, %v1292_v18  ;;  %v1307_v10 = vpop.permute.xlu0 %1306  ;;  %v2277_v12 = vunpack.c.h.bf16 %v2192_v54 }
 0x2bd   :  { %v2765_v25 = vpack.c.bf16 %v2366_v14, %v2364_v13  ;;  %2558 = vmatprep.mubr.f32.mxu1 %v3053_v26  ;;  %v2128_v31 = vmax.f32 %v1978_v16, 0.0  ;;  %v2279_v15 = vunpack.c.h.bf16 %v2193_v57 }
 0x2be   :  { %v1983_v29 = vpop.f32.mrb[70].mxu1  ;;  %v2763_v30 = vpack.c.bf16 %v2367_v20, %v2365_v19  ;;  %v1636_v33 = vpop.f32.mrb[72].mxu0  ;;  %v2129_v38 = vmax.f32 %v1980_v23, 0.0 }
 0x2bf   :  { %v1984_v34 = vadd.f32 %v1983_v29, %v1631_v27  ;;  %v1985_v36 = vpop.f32.mrb[71].mxu1  ;;  %v1638_v40 = vpop.f32.mrb[73].mxu0  ;;  %v1637_v43 = vadd.f32 %v1636_v33, %v1297_v37  ;;  %v2368_v5 = vmul.f32 %v2272_v32, %v2128_v31  ;;  %v2195_v33 = vld [vmem:[#allocation3 + $0x138] sm:$0xff] }
 0x2c0   :  { %v1986_v41 = vadd.f32 %v1985_v36, %v1633_v28  ;;  %2764 = vmatprep.subr.bf16.mxu1 %v2763_v30  ;;  %v1639_v26 = vadd.f32 %v1638_v40, %v1297_v37  ;;  %v2369_v52 = vmul.f32 %v2273_v39, %v2129_v38  ;;  %v1312_v27 = vpop.permute.xlu1 %1311  ;;  %v2194_v30 = vld [vmem:[#allocation3 + $0x130] sm:$0xff] }
 0x2c1   :  { %v2130_v44 = vmax.f32 %v1984_v34, 0.0  ;;  %2766 = vmatpush1.bf16.msra.mxu1 %v2765_v25  ;;  %v2280_v40 = vunpack.c.l.bf16 %v2194_v30 }
 0x2c2   :  { %v2131_v45 = vmax.f32 %v1986_v41, 0.0  ;;  %v1989_v46 = vpop.f32.mrb[72].mxu1  ;;  %v1642_v48 = vpop.f32.mrb[74].mxu0 }
 0x2c3   :  { %v2370_v47 = vmul.f32 %v2274_v35, %v2130_v44  ;;  %v1990_v49 = vadd.f32 %v1989_v46, %v1637_v43  ;;  %v1991_v50 = vpop.f32.mrb[73].mxu1  ;;  %v1644_v55 = vpop.f32.mrb[75].mxu0  ;;  %v1643_v59 = vadd.f32 %v1642_v48, %v1302_v51  ;;  %v2282_v43 = vunpack.c.l.bf16 %v2195_v33 }
 0x2c4   :  { %v2371_v53 = vmul.f32 %v2275_v42, %v2131_v45  ;;  %v1992_v56 = vadd.f32 %v1991_v50, %v1639_v26  ;;  %v1645_v60 = vadd.f32 %v1644_v55, %v1302_v51  ;;  %v1317_v26 = vpop.permute.xlu0 %1316  ;;  %v2281_v46 = vunpack.c.h.bf16 %v2194_v30 }
 0x2c5   :  { %v2769_v58 = vpack.c.bf16 %v2370_v47, %v2368_v5  ;;  %v2132_v7 = vmax.f32 %v1990_v49, 0.0  ;;  %v2283_v48 = vunpack.c.h.bf16 %v2195_v33 }
 0x2c6   :  { %v1995_v61 = vpop.f32.mrb[74].mxu1  ;;  %v2767_v63 = vpack.c.bf16 %v2371_v53, %v2369_v52  ;;  %v1648_v0 = vpop.f32.mrb[76].mxu0  ;;  %v2133_v11 = vmax.f32 %v1992_v56, 0.0 }
 0x2c7   :  { %v1996_v3 = vadd.f32 %v1995_v61, %v1643_v59  ;;  %v1997_v9 = vpop.f32.mrb[75].mxu1  ;;  %v1650_v13 = vpop.f32.mrb[77].mxu0  ;;  %v1649_v16 = vadd.f32 %v1648_v0, %v1307_v10  ;;  %v2372_v21 = vmul.f32 %v2276_v8, %v2132_v7  ;;  %v2197_v0 = vld [vmem:[#allocation3 + $0x148] sm:$0xff] }
 0x2c8   :  { %v1998_v14 = vadd.f32 %v1997_v9, %v1645_v60  ;;  %2768 = vmatprep.subr.bf16.mxu1 %v2767_v63  ;;  %v1651_v18 = vadd.f32 %v1650_v13, %v1307_v10  ;;  %v2373_v28 = vmul.f32 %v2277_v12, %v2133_v11  ;;  %v1322_v59 = vpop.permute.xlu1 %1321  ;;  %v2196_v63 = vld [vmem:[#allocation3 + $0x140] sm:$0xff] }
 0x2c9   :  { %v2134_v17 = vmax.f32 %v1996_v3, 0.0  ;;  %2770 = vmatpush1.bf16.msra.mxu1 %v2769_v58  ;;  %v2284_v13 = vunpack.c.l.bf16 %v2196_v63 }
 0x2ca   :  { %v2135_v19 = vmax.f32 %v1998_v14, 0.0  ;;  %v2001_v20 = vpop.f32.mrb[76].mxu1  ;;  %v1654_v23 = vpop.f32.mrb[78].mxu0 }
 0x2cb   :  { %v2374_v22 = vmul.f32 %v2278_v6, %v2134_v17  ;;  %v2002_v24 = vadd.f32 %v2001_v20, %v1649_v16  ;;  %v2003_v25 = vpop.f32.mrb[77].mxu1  ;;  %v1656_v31 = vpop.f32.mrb[79].mxu0  ;;  %v1655_v35 = vadd.f32 %v1654_v23, %v1312_v27  ;;  %v2286_v16 = vunpack.c.l.bf16 %v2197_v0 }
 0x2cc   :  { %v2375_v29 = vmul.f32 %v2279_v15, %v2135_v19  ;;  %v2004_v32 = vadd.f32 %v2003_v25, %v1651_v18  ;;  %v1657_v36 = vadd.f32 %v1656_v31, %v1312_v27  ;;  %v1327_v18 = vpop.permute.xlu0 %1326  ;;  %v2285_v20 = vunpack.c.h.bf16 %v2196_v63 }
 0x2cd   :  { %v2773_v34 = vpack.c.bf16 %v2374_v22, %v2372_v21  ;;  %v2136_v39 = vmax.f32 %v2002_v24, 0.0  ;;  %v2287_v23 = vunpack.c.h.bf16 %v2197_v0 }
 0x2ce   :  { %v2007_v37 = vpop.f32.mrb[78].mxu1  ;;  %v2771_v38 = vpack.c.bf16 %v2375_v29, %v2373_v28  ;;  %v1660_v41 = vpop.f32.mrb[80].mxu0  ;;  %v2137_v45 = vmax.f32 %v2004_v32, 0.0 }
 0x2cf   :  { %v2008_v42 = vadd.f32 %v2007_v37, %v1655_v35  ;;  %v2009_v44 = vpop.f32.mrb[79].mxu1  ;;  %v1662_v5 = vpop.f32.mrb[81].mxu0  ;;  %v1661_v49 = vadd.f32 %v1660_v41, %v1317_v26  ;;  %v2376_v54 = vmul.f32 %v2280_v40, %v2136_v39  ;;  %v2199_v41 = vld [vmem:[#allocation3 + $0x158] sm:$0xff] }
 0x2d0   :  { %v2010_v47 = vadd.f32 %v2009_v44, %v1657_v36  ;;  %2772 = vmatprep.subr.bf16.mxu1 %v2771_v38  ;;  %v1663_v51 = vadd.f32 %v1662_v5, %v1317_v26  ;;  %v2377_v60 = vmul.f32 %v2281_v46, %v2137_v45  ;;  %v1332_v35 = vpop.permute.xlu1 %1331  ;;  %v2198_v38 = vld [vmem:[#allocation3 + $0x150] sm:$0xff] }
 0x2d1   :  { %v2138_v50 = vmax.f32 %v2008_v42, 0.0  ;;  %2774 = vmatpush1.bf16.msra.mxu1 %v2773_v34  ;;  %v2288_v5 = vunpack.c.l.bf16 %v2198_v38 }
 0x2d2   :  { %v2139_v52 = vmax.f32 %v2010_v47, 0.0  ;;  %v2013_v53 = vpop.f32.mrb[80].mxu1  ;;  %v1666_v56 = vpop.f32.mrb[82].mxu0 }
 0x2d3   :  { %v2378_v55 = vmul.f32 %v2282_v43, %v2138_v50  ;;  %v2014_v57 = vadd.f32 %v2013_v53, %v1661_v49  ;;  %v2015_v58 = vpop.f32.mrb[81].mxu1  ;;  %v1668_v7 = vpop.f32.mrb[83].mxu0  ;;  %v1667_v6 = vadd.f32 %v1666_v56, %v1322_v59  ;;  %v2290_v49 = vunpack.c.l.bf16 %v2199_v41 }
 0x2d4   :  { %v2379_v61 = vmul.f32 %v2283_v48, %v2139_v52  ;;  %v2016_v8 = vadd.f32 %v2015_v58, %v1663_v51  ;;  %v1669_v9 = vadd.f32 %v1668_v7, %v1322_v59  ;;  %v1337_v51 = vpop.permute.xlu0 %1336  ;;  %v2289_v53 = vunpack.c.h.bf16 %v2198_v38 }
 0x2d5   :  { %v2777_v3 = vpack.c.bf16 %v2378_v55, %v2376_v54  ;;  %v2140_v12 = vmax.f32 %v2014_v57, 0.0  ;;  %v2291_v56 = vunpack.c.h.bf16 %v2199_v41 }
 0x2d6   :  { %v2019_v10 = vpop.f32.mrb[82].mxu1  ;;  %v2775_v11 = vpack.c.bf16 %v2379_v61, %v2377_v60  ;;  %v1672_v14 = vpop.f32.mrb[84].mxu0  ;;  %v2141_v19 = vmax.f32 %v2016_v8, 0.0 }
 0x2d7   :  { %v2020_v15 = vadd.f32 %v2019_v10, %v1667_v6  ;;  %v2021_v17 = vpop.f32.mrb[83].mxu1  ;;  %v1674_v21 = vpop.f32.mrb[85].mxu0  ;;  %v1673_v24 = vadd.f32 %v1672_v14, %v1327_v18  ;;  %v2380_v30 = vmul.f32 %v2284_v13, %v2140_v12  ;;  %v2201_v14 = vld [vmem:[#allocation3 + $0x168] sm:$0xff] }
 0x2d8   :  { %v2022_v22 = vadd.f32 %v2021_v17, %v1669_v9  ;;  %2776 = vmatprep.subr.bf16.mxu1 %v2775_v11  ;;  %v1675_v27 = vadd.f32 %v1674_v21, %v1327_v18  ;;  %v2381_v36 = vmul.f32 %v2285_v20, %v2141_v19  ;;  %v1342_v6 = vpop.permute.xlu1 %1341  ;;  %v2200_v11 = vld [vmem:[#allocation3 + $0x160] sm:$0xff] }
 0x2d9   :  { %v2142_v25 = vmax.f32 %v2020_v15, 0.0  ;;  %2778 = vmatpush1.bf16.msra.mxu1 %v2777_v3  ;;  %v2292_v21 = vunpack.c.l.bf16 %v2200_v11 }
 0x2da   :  { %v2143_v28 = vmax.f32 %v2022_v22, 0.0  ;;  %v2025_v29 = vpop.f32.mrb[84].mxu1  ;;  %v1678_v32 = vpop.f32.mrb[86].mxu0 }
 0x2db   :  { %v2382_v31 = vmul.f32 %v2286_v16, %v2142_v25  ;;  %v2026_v33 = vadd.f32 %v2025_v29, %v1673_v24  ;;  %v2027_v34 = vpop.f32.mrb[85].mxu1  ;;  %v1680_v39 = vpop.f32.mrb[87].mxu0  ;;  %v1679_v43 = vadd.f32 %v1678_v32, %v1332_v35  ;;  %v2294_v24 = vunpack.c.l.bf16 %v2201_v14 }
 0x2dc   :  { %v2383_v37 = vmul.f32 %v2287_v23, %v2143_v28  ;;  %v2028_v40 = vadd.f32 %v2027_v34, %v1675_v27  ;;  %v1681_v44 = vadd.f32 %v1680_v39, %v1332_v35  ;;  %v1347_v27 = vpop.permute.xlu0 %1346  ;;  %v2293_v29 = vunpack.c.h.bf16 %v2200_v11 }
 0x2dd   :  { %v2781_v42 = vpack.c.bf16 %v2382_v31, %v2380_v30  ;;  %v2144_v46 = vmax.f32 %v2026_v33, 0.0  ;;  %v2295_v32 = vunpack.c.h.bf16 %v2201_v14 }
 0x2de   :  { %v2031_v26 = vpop.f32.mrb[86].mxu1  ;;  %v2779_v45 = vpack.c.bf16 %v2383_v37, %v2381_v36  ;;  %v1684_v47 = vpop.f32.mrb[88].mxu0  ;;  %v2145_v52 = vmax.f32 %v2028_v40, 0.0 }
 0x2df   :  { %v2032_v48 = vadd.f32 %v2031_v26, %v1679_v43  ;;  %v2033_v50 = vpop.f32.mrb[87].mxu1  ;;  %v1686_v54 = vpop.f32.mrb[89].mxu0  ;;  %v1685_v57 = vadd.f32 %v1684_v47, %v1337_v51  ;;  %v2384_v63 = vmul.f32 %v2288_v5, %v2144_v46  ;;  %v2203_v47 = vld [vmem:[#allocation3 + $0x178] sm:$0xff] }
 0x2e0   :  { %v2034_v55 = vadd.f32 %v2033_v50, %v1681_v44  ;;  %2780 = vmatprep.subr.bf16.mxu1 %v2779_v45  ;;  %v1687_v59 = vadd.f32 %v1686_v54, %v1337_v51  ;;  %v2385_v9 = vmul.f32 %v2289_v53, %v2145_v52  ;;  %v1352_v43 = vpop.permute.xlu1 %1351  ;;  %v2202_v45 = vld [vmem:[#allocation3 + $0x170] sm:$0xff] }
 0x2e1   :  { %v2146_v58 = vmax.f32 %v2032_v48, 0.0  ;;  %2782 = vmatpush1.bf16.msra.mxu1 %v2781_v42  ;;  %v2296_v54 = vunpack.c.l.bf16 %v2202_v45 }
 0x2e2   :  { %v2147_v60 = vmax.f32 %v2034_v55, 0.0  ;;  %v2037_v61 = vpop.f32.mrb[88].mxu1  ;;  %v1690_v8 = vpop.f32.mrb[90].mxu0 }
 0x2e3   :  { %v2386_v7 = vmul.f32 %v2290_v49, %v2146_v58  ;;  %v2038_v0 = vadd.f32 %v2037_v61, %v1685_v57  ;;  %v2039_v3 = vpop.f32.mrb[89].mxu1  ;;  %v1692_v12 = vpop.f32.mrb[91].mxu0  ;;  %v1691_v16 = vadd.f32 %v1690_v8, %v1342_v6  ;;  %v2299_v61 = vunpack.c.h.bf16 %v2203_v47 }
 0x2e4   :  { %v2387_v10 = vmul.f32 %v2291_v56, %v2147_v60  ;;  %v2040_v13 = vadd.f32 %v2039_v3, %v1687_v59  ;;  %v1693_v17 = vadd.f32 %v1692_v12, %v1342_v6  ;;  %v2298_v56 = vunpack.c.l.bf16 %v2203_v47 }
 0x2e5   :  { %v2785_v15 = vpack.c.bf16 %v2386_v7, %v2384_v63  ;;  %v2148_v20 = vmax.f32 %v2038_v0, 0.0  ;;  %v2297_v59 = vunpack.c.h.bf16 %v2202_v45 }
 0x2e6   :  { %v2043_v18 = vpop.f32.mrb[90].mxu1  ;;  %v2783_v19 = vpack.c.bf16 %v2387_v10, %v2385_v9  ;;  %v1696_v22 = vpop.f32.mrb[92].mxu0  ;;  %v2149_v28 = vmax.f32 %v2040_v13, 0.0  ;;  %v2418_v9 = vsub.s32 2, %v3303_v1  ;;  %v3054_v13 = vmov 1966171168  }
 0x2e7   :  { %v2044_v23 = vadd.f32 %v2043_v18, %v1691_v16  ;;  %v2045_v25 = vpop.f32.mrb[91].mxu1  ;;  %v1698_v30 = vpop.f32.mrb[93].mxu0  ;;  %v1697_v33 = vadd.f32 %v1696_v22, %v1347_v27  ;;  %v2388_v38 = vmul.f32 %v2292_v21, %v2148_v20  ;;  %v2569_v14 = vunpack.c.l.s4 %v3054_v13 }
 0x2e8   :  { %v2046_v31 = vadd.f32 %v2045_v25, %v1693_v17  ;;  %2784 = vmatprep.subr.bf16.mxu1 %v2783_v19  ;;  %v1699_v35 = vadd.f32 %v1698_v30, %v1347_v27  ;;  %v2389_v44 = vmul.f32 %v2293_v29, %v2149_v28  ;;  %v2419_v12 = vrot.slane %v4149_v2, %v2418_v9 }
 0x2e9   :  { %v2150_v34 = vmax.f32 %v2044_v23, 0.0  ;;  %2786 = vmatpush1.bf16.msra.mxu1 %v2785_v15  ;;  %v2401_v15 = vpop.permute.xlu0 %2400  ;;  %v2570_v16 = vunpack.c.0.s8 %v2569_v14 }
 0x2ea   :  { %v2151_v36 = vmax.f32 %v2046_v31, 0.0  ;;  %v2049_v37 = vpop.f32.mrb[92].mxu1  ;;  %v1702_v40 = vpop.f32.mrb[94].mxu0  ;;  %v2406_v17 = vrot.slane %v2401_v15, %v3312_v4 }
 0x2eb   :  { %v2390_v39 = vmul.f32 %v2294_v24, %v2150_v34  ;;  %v2050_v41 = vadd.f32 %v2049_v37, %v1697_v33  ;;  %v2051_v42 = vpop.f32.mrb[93].mxu1  ;;  %v1704_v46 = vpop.f32.mrb[95].mxu0  ;;  %v1703_v49 = vadd.f32 %v1702_v40, %v1352_v43  ;;  %v2573_v22 = vsub.s32 %v2570_v16, %v3303_v1 }
 0x2ec   :  { %v2391_v26 = vmul.f32 %v2295_v32, %v2151_v36  ;;  %v2052_v5 = vadd.f32 %v2051_v42, %v1699_v35  ;;  %v1705_v50 = vadd.f32 %v1704_v46, %v1352_v43 }
 0x2ed   :  { %v2789_v48 = vpack.c.bf16 %v2390_v39, %v2388_v38  ;;  %v2152_v53 = vmax.f32 %v2050_v41, 0.0 }
 0x2ee   :  { %v2055_v51 = vpop.f32.mrb[94].mxu1  ;;  %v2787_v52 = vpack.c.bf16 %v2391_v26, %v2389_v44  ;;  %v2153_v58 = vmax.f32 %v2052_v5, 0.0 }
 0x2ef   :  { %v2056_v55 = vadd.f32 %v2055_v51, %v1703_v49  ;;  %v2057_v57 = vpop.f32.mrb[95].mxu1  ;;  %v2392_v8 = vmul.f32 %v2296_v54, %v2152_v53 }
 0x2f0   :  { %v2058_v60 = vadd.f32 %v2057_v57, %v1705_v50  ;;  %2788 = vmatprep.subr.bf16.mxu1 %v2787_v52  ;;  %v2393_v3 = vmul.f32 %v2297_v59, %v2153_v58 }
 0x2f1   :  { %v2154_v63 = vmax.f32 %v2056_v55, 0.0  ;;  %2790 = vmatpush1.bf16.msra.mxu1 %v2789_v48 }
 0x2f2   :  { %v2155_v7 = vmax.f32 %v2058_v60, 0.0 }
 0x2f3   :  { %v2394_v0 = vmul.f32 %v2298_v56, %v2154_v63 }
 0x2f4   :  { %v2395_v6 = vmul.f32 %v2299_v61, %v2155_v7 }
 0x2f5   :  { %v2793_v10 = vpack.c.bf16 %v2394_v0, %v2392_v8 }
 0x2f6   :  { %v2791_v11 = vpack.c.bf16 %v2395_v6, %v2393_v3 }
 0x2f8   :  { %2792 = vmatprep.subr.bf16.mxu1 %v2791_v11 }
 0x2f9   :  { %2794 = vmatpush1.bf16.msra.mxu1 %v2793_v10 }
 0x2fc   :  { %2559 = vmatmul.mubr.f32.vlgmr.msra.gmra.mrb[96].mxu1 %v2419_v12 }
 0x3cf   :  { %v2560_v18 = vpop.f32.mrb[96].mxu1 }
 0x3d0   :  { %v2987_v19 = vadd.f32 %v2560_v18, %v2406_v17  ;;  %v2562_v20 = vpop.f32.mrb[97].mxu1 }
 0x3d1   :  { %v2988_v21 = vadd.f32 %v2562_v20, %v2406_v17 }
 0x3d3   :  { %v2567_v23 = vcombine.low %v2987_v19, %v2988_v21 }
 0x3d5   :  { %v2574_v24 = vrot.slane %v2567_v23, %v2573_v22 }
 0x3d7   :  { %v2581_v2 = vrot.slane %v2574_v24, %v2573_v22 }
 0x3d9   :  { %2587 = vst.msk [vmem:[#allocation6] sm:$0x3] %vm2585_vm0, %v2581_v2 }
 0x3da   :  { %3034 = shalt.err (!%p3031_p12)
}
 0x3db   :  { %s3035_s20 = scalar_lea.hbm %s4179_s8, 32 }
 0x3dc   :  { %p3036_p13 = scmp.ne.s32.totalorder %s4179_s8, %s3035_s20  ;;  %p3039_p0 = scmp.lt.u32.totalorder %s3035_s20, %s4179_s8 }
 0x3de   :  { %p3041_p1 = pnand %p3039_p0, %p3036_p13 }
 0x3e0   :  { %3044 = shalt.err (!%p3041_p1)
}
 0x3e1   :  { %2597 = dma.vmem_to_hbm [thread:$0]  %s2595_s16, 32, %s4179_s8, [#allocation5]  }
 0x3e2   :  { %3047 = dma.done.wait [#allocation5], 32  }
 0x3e3   :  { %3048 = vsyncadd [#allocation5], 4294967264 }
 0x3e4   :  { %2601 = vsyncpa [#allocation4], 1 }
 0x3e5   :  { %2602 = vsyncpa [#allocation5], 1 }

</bundles_post_ra>
